<compile_context>
chip_gen: v7x
topology: tpu7x:2x2x1
jax: 0.10.0
libtpu: 0.0.40
codegen_flags: <defaults>
</compile_context>

<pallas_src>
import math
import functools

import jax
import jax.numpy as jnp
from jax.experimental import pallas as pl
from jax.experimental.pallas import tpu as pltpu


def _torch_norm(x, alpha, bias, eps, d):
    # Matches the PyTorch `Norm` module: torch.std uses the UNBIASED estimator
    # (ddof=1), and eps is added to std (not var).  All in f32.
    mean = jnp.mean(x, axis=-1, keepdims=True)
    centered = x - mean
    var = jnp.sum(centered * centered, axis=-1, keepdims=True) * (1.0 / (d - 1))
    inv = 1.0 / (jnp.sqrt(var) + eps)
    return alpha * centered * inv + bias


def encoder_layer_kernel(
    xf_ref, xq_ref, mask_ref,
    a1_ref, b1_ref,
    wq_ref, bq_ref, wk_ref, bk_ref, wv_ref, bv_ref,
    wo_ref, bo_ref,
    a2_ref, b2_ref,
    w1_ref, bf1_ref, w2_ref, bf2_ref,
    o_ref,
    k_scr, v_scr,
    *, heads, d_k, eps,
):
    D = heads * d_k
    qi = pl.program_id(1)

    def split_heads(m):  # (N, D) f32 -> (H, N, d_k)
        return jnp.stack(
            [m[:, h * d_k:(h + 1) * d_k] for h in range(heads)], axis=0)

    # ---- once per batch row: norm_1 + K/V projections into bf16 VMEM scratch ----
    @pl.when(qi == 0)
    def _():
        xf = xf_ref[0].astype(jnp.float32)                                # (S, D)
        x2f = _torch_norm(xf, a1_ref[...], b1_ref[...], eps, D).astype(jnp.bfloat16)
        k = jnp.dot(x2f, wk_ref[...], preferred_element_type=jnp.float32) + bk_ref[...]
        v = jnp.dot(x2f, wv_ref[...], preferred_element_type=jnp.float32) + bv_ref[...]
        k_scr[...] = split_heads(k).astype(jnp.bfloat16)                  # (H, S, dk)
        v_scr[...] = split_heads(v).astype(jnp.bfloat16)                  # (H, S, dk)

    # ---- per query tile: norm_1, Q projection ----
    xq = xq_ref[0].astype(jnp.float32)                                    # (TQ, D)
    x2q = _torch_norm(xq, a1_ref[...], b1_ref[...], eps, D)
    q = jnp.dot(x2q.astype(jnp.bfloat16), wq_ref[...],
                preferred_element_type=jnp.float32) + bq_ref[...]
    q = q * (1.0 / math.sqrt(d_k))                                        # fold 1/sqrt(dk)
    qh = split_heads(q).astype(jnp.bfloat16)                              # (H, TQ, dk)

    # ---- attention (head-batched), additive mask bias hoisted ----
    neg = jnp.where(mask_ref[0] == 0.0, -1e9, 0.0)                        # (1, S)
    scores = jnp.einsum('hqd,hkd->hqk', qh, k_scr[...],
                        preferred_element_type=jnp.float32)               # (H, TQ, S)
    scores = scores + neg[None]
    s_max = jnp.max(scores, axis=-1, keepdims=True)
    p = jnp.exp(scores - s_max)
    p = p * pl.reciprocal(jnp.sum(p, axis=-1, keepdims=True), approx=True)

    attn = jnp.einsum('hqk,hkd->hqd', p.astype(jnp.bfloat16), v_scr[...],
                      preferred_element_type=jnp.float32)                 # (H, TQ, dk)
    concat = jnp.concatenate([attn[h] for h in range(heads)], axis=-1)    # (TQ, D)
    attn_out = jnp.dot(concat.astype(jnp.bfloat16), wo_ref[...],
                       preferred_element_type=jnp.float32) + bo_ref[...]

    # TODO(synk): nn.Dropout layers are treated as eval-mode identities (stochastic op).
    x = xq + attn_out

    # ---- norm_2 + feed-forward ----
    x2 = _torch_norm(x, a2_ref[...], b2_ref[...], eps, D)
    h1 = jnp.dot(x2.astype(jnp.bfloat16), w1_ref[...],
                 preferred_element_type=jnp.float32) + bf1_ref[...]
    h1 = jnp.maximum(h1, 0.0)
    ff = jnp.dot(h1.astype(jnp.bfloat16), w2_ref[...],
                 preferred_element_type=jnp.float32) + bf2_ref[...]
    x = x + ff

    o_ref[0] = x.astype(o_ref.dtype)


def encoder_layer(x, mask, params, *, heads, eps=1e-6, tq=None):
    B, S, D = x.shape
    assert D % heads == 0
    d_k = D // heads
    if tq is None:
        tq = S if S <= 128 else 128
    if S % tq != 0:
        tq = S
    n_q = S // tq

    f32, bf16 = jnp.float32, jnp.bfloat16
    # Pre-transpose weights to [in, out] and cast to bf16 on the host (one-time
    # layout plumbing); biases / norm params stay f32.
    param_list = [
        params["a1"].astype(f32), params["b1"].astype(f32),
        params["wq"].T.astype(bf16), params["bq"].astype(f32),
        params["wk"].T.astype(bf16), params["bk"].astype(f32),
        params["wv"].T.astype(bf16), params["bv"].astype(f32),
        params["wo"].T.astype(bf16), params["bo"].astype(f32),
        params["a2"].astype(f32), params["b2"].astype(f32),
        params["w1"].T.astype(bf16), params["bf1"].astype(f32),
        params["w2"].T.astype(bf16), params["bf2"].astype(f32),
    ]

    def full_spec(p):
        nd = p.ndim
        return pl.BlockSpec(p.shape, lambda b, q, _nd=nd: (0,) * _nd)

    in_specs = [
        pl.BlockSpec((1, S, D), lambda b, q: (b, 0, 0)),    # x, full seq (K/V source)
        pl.BlockSpec((1, tq, D), lambda b, q: (b, q, 0)),   # x, query tile
        pl.BlockSpec((1, 1, S), lambda b, q: (b, 0, 0)),    # mask
    ] + [full_spec(p) for p in param_list]

    kernel = functools.partial(encoder_layer_kernel, heads=heads, d_k=d_k, eps=eps)

    return pl.pallas_call(
        kernel,
        out_shape=jax.ShapeDtypeStruct((B, S, D), x.dtype),
        grid=(B, n_q),
        in_specs=in_specs,
        out_specs=pl.BlockSpec((1, tq, D), lambda b, q: (b, q, 0)),
        scratch_shapes=[
            pltpu.VMEM((heads, S, d_k), jnp.bfloat16),   # K, head-major, reused over qi
            pltpu.VMEM((heads, S, d_k), jnp.bfloat16),   # V
        ],
        compiler_params=pltpu.CompilerParams(
            # batch axis megacore-shardable; query axis sequential (K/V scratch reuse)
            dimension_semantics=("parallel", "arbitrary"),
            vmem_limit_bytes=64 * 1024 * 1024,
        ),
    )(x, x, mask, *param_list)


def init_params(key, d_model, d_ff):
    keys = jax.random.split(key, 8)

    def lin(k, out_f, in_f):
        # deterministic synthetic init (not a checkpoint load); PyTorch [out, in] layout
        bound = 1.0 / math.sqrt(in_f)
        kw, kb = jax.random.split(k)
        w = jax.random.uniform(kw, (out_f, in_f), jnp.float32, -bound, bound)
        b = jax.random.uniform(kb, (1, out_f), jnp.float32, -bound, bound)
        return w, b

    wq, bq = lin(keys[0], d_model, d_model)
    wk, bk = lin(keys[1], d_model, d_model)
    wv, bv = lin(keys[2], d_model, d_model)
    wo, bo = lin(keys[3], d_model, d_model)
    w1, bf1 = lin(keys[4], d_ff, d_model)
    w2, bf2 = lin(keys[5], d_model, d_ff)

    return {
        "a1": jnp.ones((1, d_model), jnp.float32),
        "b1": jnp.zeros((1, d_model), jnp.float32),
        "wq": wq, "bq": bq, "wk": wk, "bk": bk,
        "wv": wv, "bv": bv, "wo": wo, "bo": bo,
        "a2": jnp.ones((1, d_model), jnp.float32),
        "b2": jnp.zeros((1, d_model), jnp.float32),
        "w1": w1, "bf1": bf1, "w2": w2, "bf2": bf2,
    }


if __name__ == "__main__":
    B, S, D, HEADS, D_FF = 2, 8, 32, 4, 64

    key = jax.random.PRNGKey(0)
    kx, kp = jax.random.split(key)

    x = jax.random.normal(kx, (B, S, D), jnp.float32)
    # mask: keep the first S-2 positions, mask the last 2 (0 == masked).
    mask = (jnp.arange(S) < S - 2).astype(jnp.float32)
    mask = jnp.broadcast_to(mask[None, None, :], (B, 1, S))

    params = init_params(kp, D, D_FF)

    out = encoder_layer(x, mask, params, heads=HEADS)
    out = jax.block_until_ready(out)

    assert out.shape == (B, S, D)
    assert bool(jnp.all(jnp.isfinite(out)))
    print("KERNEL_OK")
</pallas_src>

<mosaic_0001>
module attributes {stable_mosaic.version = 11 : i64} {
  func.func @encoder_layer_kernel(%arg0: i32, %arg1: i32, %arg2: memref<1x8x32xf32, #tpu.memory_space<vmem>>, %arg3: memref<1x8x32xf32, #tpu.memory_space<vmem>>, %arg4: memref<1x1x8xf32, #tpu.memory_space<vmem>>, %arg5: memref<1x32xf32, #tpu.memory_space<vmem>>, %arg6: memref<1x32xf32, #tpu.memory_space<vmem>>, %arg7: memref<32x32xbf16, #tpu.memory_space<vmem>>, %arg8: memref<1x32xf32, #tpu.memory_space<vmem>>, %arg9: memref<32x32xbf16, #tpu.memory_space<vmem>>, %arg10: memref<1x32xf32, #tpu.memory_space<vmem>>, %arg11: memref<32x32xbf16, #tpu.memory_space<vmem>>, %arg12: memref<1x32xf32, #tpu.memory_space<vmem>>, %arg13: memref<32x32xbf16, #tpu.memory_space<vmem>>, %arg14: memref<1x32xf32, #tpu.memory_space<vmem>>, %arg15: memref<1x32xf32, #tpu.memory_space<vmem>>, %arg16: memref<1x32xf32, #tpu.memory_space<vmem>>, %arg17: memref<32x64xbf16, #tpu.memory_space<vmem>>, %arg18: memref<1x64xf32, #tpu.memory_space<vmem>>, %arg19: memref<64x32xbf16, #tpu.memory_space<vmem>>, %arg20: memref<1x32xf32, #tpu.memory_space<vmem>>, %arg21: memref<1x8x32xf32, #tpu.memory_space<vmem>>, %arg22: memref<4x8x8xbf16, #tpu.memory_space<vmem>>, %arg23: memref<4x8x8xbf16, #tpu.memory_space<vmem>>) attributes {dimension_semantics = [#tpu.dimension_semantics<parallel>, #tpu.dimension_semantics<arbitrary>], iteration_bounds = array<i64: 2, 1>, scalar_prefetch = 0 : i64, scratch_operands = 2 : i64, tpu.core_type = #tpu.core_type<tc>, window_params = [{transform_indices = @transform_0, window_bounds = array<i64: 1, 8, 32>}, {transform_indices = @transform_1, window_bounds = array<i64: 1, 8, 32>}, {transform_indices = @transform_2, window_bounds = array<i64: 1, 1, 8>}, {pipeline_mode = #tpu.pipeline_mode<synchronous>, transform_indices = @transform_3, window_bounds = array<i64: 1, 32>}, {pipeline_mode = #tpu.pipeline_mode<synchronous>, transform_indices = @transform_4, window_bounds = array<i64: 1, 32>}, {pipeline_mode = #tpu.pipeline_mode<synchronous>, transform_indices = @transform_5, window_bounds = array<i64: 32, 32>}, {pipeline_mode = #tpu.pipeline_mode<synchronous>, transform_indices = @transform_6, window_bounds = array<i64: 1, 32>}, {pipeline_mode = #tpu.pipeline_mode<synchronous>, transform_indices = @transform_7, window_bounds = array<i64: 32, 32>}, {pipeline_mode = #tpu.pipeline_mode<synchronous>, transform_indices = @transform_8, window_bounds = array<i64: 1, 32>}, {pipeline_mode = #tpu.pipeline_mode<synchronous>, transform_indices = @transform_9, window_bounds = array<i64: 32, 32>}, {pipeline_mode = #tpu.pipeline_mode<synchronous>, transform_indices = @transform_10, window_bounds = array<i64: 1, 32>}, {pipeline_mode = #tpu.pipeline_mode<synchronous>, transform_indices = @transform_11, window_bounds = array<i64: 32, 32>}, {pipeline_mode = #tpu.pipeline_mode<synchronous>, transform_indices = @transform_12, window_bounds = array<i64: 1, 32>}, {pipeline_mode = #tpu.pipeline_mode<synchronous>, transform_indices = @transform_13, window_bounds = array<i64: 1, 32>}, {pipeline_mode = #tpu.pipeline_mode<synchronous>, transform_indices = @transform_14, window_bounds = array<i64: 1, 32>}, {pipeline_mode = #tpu.pipeline_mode<synchronous>, transform_indices = @transform_15, window_bounds = array<i64: 32, 64>}, {pipeline_mode = #tpu.pipeline_mode<synchronous>, transform_indices = @transform_16, window_bounds = array<i64: 1, 64>}, {pipeline_mode = #tpu.pipeline_mode<synchronous>, transform_indices = @transform_17, window_bounds = array<i64: 64, 32>}, {pipeline_mode = #tpu.pipeline_mode<synchronous>, transform_indices = @transform_18, window_bounds = array<i64: 1, 32>}, {transform_indices = @transform_19, window_bounds = array<i64: 1, 8, 32>}]} {
    %c0_i32 = arith.constant 0 : i32
    %0 = arith.cmpi eq, %arg1, %c0_i32 : i32
    %1 = arith.extui %0 : i1 to i32
    %c0_i32_0 = arith.constant 0 : i32
    %2 = arith.cmpi ne, %1, %c0_i32_0 : i32
    scf.if %2 {
      %c0_63 = arith.constant 0 : index
      %c0_64 = arith.constant 0 : index
      %c0_65 = arith.constant 0 : index
      %130 = vector.load %arg2[%c0_63, %c0_64, %c0_65] : memref<1x8x32xf32, #tpu.memory_space<vmem>>, vector<1x8x32xf32>
      %131 = vector.shape_cast %130 : vector<1x8x32xf32> to vector<8x32xf32>
      %c0_66 = arith.constant 0 : index
      %c0_67 = arith.constant 0 : index
      %132 = vector.load %arg5[%c0_66, %c0_67] : memref<1x32xf32, #tpu.memory_space<vmem>>, vector<1x32xf32>
      %c0_68 = arith.constant 0 : index
      %c0_69 = arith.constant 0 : index
      %133 = vector.load %arg6[%c0_68, %c0_69] : memref<1x32xf32, #tpu.memory_space<vmem>>, vector<1x32xf32>
      %cst_70 = arith.constant dense<0.000000e+00> : vector<8xf32>
      %134 = vector.multi_reduction <add>, %131, %cst_70 [1] : vector<8x32xf32> to vector<8xf32>
      %135 = vector.shape_cast %134 : vector<8xf32> to vector<8x1xf32>
      %cst_71 = arith.constant 3.200000e+01 : f32
      %136 = vector.broadcast %cst_71 : f32 to vector<8x1xf32>
      %137 = arith.divf %135, %136 : vector<8x1xf32>
      %138 = vector.broadcast %137 : vector<8x1xf32> to vector<8x32xf32>
      %139 = arith.subf %131, %138 : vector<8x32xf32>
      %140 = arith.mulf %139, %139 : vector<8x32xf32>
      %cst_72 = arith.constant dense<0.000000e+00> : vector<8xf32>
      %141 = vector.multi_reduction <add>, %140, %cst_72 [1] : vector<8x32xf32> to vector<8xf32>
      %142 = vector.shape_cast %141 : vector<8xf32> to vector<8x1xf32>
      %cst_73 = arith.constant 0.0322580636 : f32
      %143 = vector.broadcast %cst_73 : f32 to vector<8x1xf32>
      %144 = arith.mulf %142, %143 : vector<8x1xf32>
      %145 = math.sqrt %144 : vector<8x1xf32>
      %cst_74 = arith.constant 9.99999997E-7 : f32
      %146 = vector.broadcast %cst_74 : f32 to vector<8x1xf32>
      %147 = arith.addf %145, %146 : vector<8x1xf32>
      %cst_75 = arith.constant 1.000000e+00 : f32
      %148 = vector.broadcast %cst_75 : f32 to vector<8x1xf32>
      %149 = arith.divf %148, %147 : vector<8x1xf32>
      %150 = vector.broadcast %132 : vector<1x32xf32> to vector<8x32xf32>
      %151 = arith.mulf %150, %139 : vector<8x32xf32>
      %152 = vector.broadcast %149 : vector<8x1xf32> to vector<8x32xf32>
      %153 = arith.mulf %151, %152 : vector<8x32xf32>
      %154 = vector.broadcast %133 : vector<1x32xf32> to vector<8x32xf32>
      %155 = arith.addf %153, %154 : vector<8x32xf32>
      %156 = arith.truncf %155 : vector<8x32xf32> to vector<8x32xbf16>
      %c0_76 = arith.constant 0 : index
      %c0_77 = arith.constant 0 : index
      %157 = vector.load %arg9[%c0_76, %c0_77] : memref<32x32xbf16, #tpu.memory_space<vmem>>, vector<32x32xbf16>
      %cst_78 = arith.constant dense<0.000000e+00> : vector<8x32xf32>
      %158 = tpu.matmul %156, %157, %cst_78 {dimension_numbers = #tpu.dot_dimension_numbers<[1], [0], [0], [1], [0, 0, 1, 1], [], []>} : vector<8x32xbf16>, vector<32x32xbf16>, vector<8x32xf32> -> vector<8x32xf32>
      %c0_79 = arith.constant 0 : index
      %c0_80 = arith.constant 0 : index
      %159 = vector.load %arg10[%c0_79, %c0_80] : memref<1x32xf32, #tpu.memory_space<vmem>>, vector<1x32xf32>
      %160 = vector.broadcast %159 : vector<1x32xf32> to vector<8x32xf32>
      %161 = arith.addf %158, %160 : vector<8x32xf32>
      %c0_81 = arith.constant 0 : index
      %c0_82 = arith.constant 0 : index
      %162 = vector.load %arg11[%c0_81, %c0_82] : memref<32x32xbf16, #tpu.memory_space<vmem>>, vector<32x32xbf16>
      %cst_83 = arith.constant dense<0.000000e+00> : vector<8x32xf32>
      %163 = tpu.matmul %156, %162, %cst_83 {dimension_numbers = #tpu.dot_dimension_numbers<[1], [0], [0], [1], [0, 0, 1, 1], [], []>} : vector<8x32xbf16>, vector<32x32xbf16>, vector<8x32xf32> -> vector<8x32xf32>
      %c0_84 = arith.constant 0 : index
      %c0_85 = arith.constant 0 : index
      %164 = vector.load %arg12[%c0_84, %c0_85] : memref<1x32xf32, #tpu.memory_space<vmem>>, vector<1x32xf32>
      %165 = vector.broadcast %164 : vector<1x32xf32> to vector<8x32xf32>
      %166 = arith.addf %163, %165 : vector<8x32xf32>
      %167 = vector.extract_strided_slice %161 {offsets = [0, 0], sizes = [8, 8], strides = [1, 1]} : vector<8x32xf32> to vector<8x8xf32>
      %168 = vector.extract_strided_slice %161 {offsets = [0, 8], sizes = [8, 8], strides = [1, 1]} : vector<8x32xf32> to vector<8x8xf32>
      %169 = vector.extract_strided_slice %161 {offsets = [0, 16], sizes = [8, 8], strides = [1, 1]} : vector<8x32xf32> to vector<8x8xf32>
      %170 = vector.extract_strided_slice %161 {offsets = [0, 24], sizes = [8, 8], strides = [1, 1]} : vector<8x32xf32> to vector<8x8xf32>
      %171 = vector.shape_cast %167 : vector<8x8xf32> to vector<1x8x8xf32>
      %172 = vector.shape_cast %168 : vector<8x8xf32> to vector<1x8x8xf32>
      %173 = vector.shape_cast %169 : vector<8x8xf32> to vector<1x8x8xf32>
      %174 = vector.shape_cast %170 : vector<8x8xf32> to vector<1x8x8xf32>
      %175 = tpu.concatenate %171, %172, %173, %174 in 0 : vector<1x8x8xf32>, vector<1x8x8xf32>, vector<1x8x8xf32>, vector<1x8x8xf32> -> vector<4x8x8xf32>
      %176 = arith.truncf %175 : vector<4x8x8xf32> to vector<4x8x8xbf16>
      %c0_86 = arith.constant 0 : index
      %c0_87 = arith.constant 0 : index
      %c0_88 = arith.constant 0 : index
      %177 = vector.load %arg22[%c0_86, %c0_87, %c0_88] : memref<4x8x8xbf16, #tpu.memory_space<vmem>>, vector<4x8x8xbf16>
      tpu.vector_store %arg22[%c0_86, %c0_87, %c0_88], %176 {strides = array<i32>} : memref<4x8x8xbf16, #tpu.memory_space<vmem>>, vector<4x8x8xbf16>,
      %178 = vector.extract_strided_slice %166 {offsets = [0, 0], sizes = [8, 8], strides = [1, 1]} : vector<8x32xf32> to vector<8x8xf32>
      %179 = vector.extract_strided_slice %166 {offsets = [0, 8], sizes = [8, 8], strides = [1, 1]} : vector<8x32xf32> to vector<8x8xf32>
      %180 = vector.extract_strided_slice %166 {offsets = [0, 16], sizes = [8, 8], strides = [1, 1]} : vector<8x32xf32> to vector<8x8xf32>
      %181 = vector.extract_strided_slice %166 {offsets = [0, 24], sizes = [8, 8], strides = [1, 1]} : vector<8x32xf32> to vector<8x8xf32>
      %182 = vector.shape_cast %178 : vector<8x8xf32> to vector<1x8x8xf32>
      %183 = vector.shape_cast %179 : vector<8x8xf32> to vector<1x8x8xf32>
      %184 = vector.shape_cast %180 : vector<8x8xf32> to vector<1x8x8xf32>
      %185 = vector.shape_cast %181 : vector<8x8xf32> to vector<1x8x8xf32>
      %186 = tpu.concatenate %182, %183, %184, %185 in 0 : vector<1x8x8xf32>, vector<1x8x8xf32>, vector<1x8x8xf32>, vector<1x8x8xf32> -> vector<4x8x8xf32>
      %187 = arith.truncf %186 : vector<4x8x8xf32> to vector<4x8x8xbf16>
      %c0_89 = arith.constant 0 : index
      %c0_90 = arith.constant 0 : index
      %c0_91 = arith.constant 0 : index
      %188 = vector.load %arg23[%c0_89, %c0_90, %c0_91] : memref<4x8x8xbf16, #tpu.memory_space<vmem>>, vector<4x8x8xbf16>
      tpu.vector_store %arg23[%c0_89, %c0_90, %c0_91], %187 {strides = array<i32>} : memref<4x8x8xbf16, #tpu.memory_space<vmem>>, vector<4x8x8xbf16>,
    } else {
    }
    %c0 = arith.constant 0 : index
    %c0_1 = arith.constant 0 : index
    %c0_2 = arith.constant 0 : index
    %3 = vector.load %arg3[%c0, %c0_1, %c0_2] : memref<1x8x32xf32, #tpu.memory_space<vmem>>, vector<1x8x32xf32>
    %4 = vector.shape_cast %3 : vector<1x8x32xf32> to vector<8x32xf32>
    %c0_3 = arith.constant 0 : index
    %c0_4 = arith.constant 0 : index
    %5 = vector.load %arg5[%c0_3, %c0_4] : memref<1x32xf32, #tpu.memory_space<vmem>>, vector<1x32xf32>
    %c0_5 = arith.constant 0 : index
    %c0_6 = arith.constant 0 : index
    %6 = vector.load %arg6[%c0_5, %c0_6] : memref<1x32xf32, #tpu.memory_space<vmem>>, vector<1x32xf32>
    %cst = arith.constant dense<0.000000e+00> : vector<8xf32>
    %7 = vector.multi_reduction <add>, %4, %cst [1] : vector<8x32xf32> to vector<8xf32>
    %8 = vector.shape_cast %7 : vector<8xf32> to vector<8x1xf32>
    %cst_7 = arith.constant 3.200000e+01 : f32
    %9 = vector.broadcast %cst_7 : f32 to vector<8x1xf32>
    %10 = arith.divf %8, %9 : vector<8x1xf32>
    %11 = vector.broadcast %10 : vector<8x1xf32> to vector<8x32xf32>
    %12 = arith.subf %4, %11 : vector<8x32xf32>
    %13 = arith.mulf %12, %12 : vector<8x32xf32>
    %cst_8 = arith.constant dense<0.000000e+00> : vector<8xf32>
    %14 = vector.multi_reduction <add>, %13, %cst_8 [1] : vector<8x32xf32> to vector<8xf32>
    %15 = vector.shape_cast %14 : vector<8xf32> to vector<8x1xf32>
    %cst_9 = arith.constant 0.0322580636 : f32
    %16 = vector.broadcast %cst_9 : f32 to vector<8x1xf32>
    %17 = arith.mulf %15, %16 : vector<8x1xf32>
    %18 = math.sqrt %17 : vector<8x1xf32>
    %cst_10 = arith.constant 9.99999997E-7 : f32
    %19 = vector.broadcast %cst_10 : f32 to vector<8x1xf32>
    %20 = arith.addf %18, %19 : vector<8x1xf32>
    %cst_11 = arith.constant 1.000000e+00 : f32
    %21 = vector.broadcast %cst_11 : f32 to vector<8x1xf32>
    %22 = arith.divf %21, %20 : vector<8x1xf32>
    %23 = vector.broadcast %5 : vector<1x32xf32> to vector<8x32xf32>
    %24 = arith.mulf %23, %12 : vector<8x32xf32>
    %25 = vector.broadcast %22 : vector<8x1xf32> to vector<8x32xf32>
    %26 = arith.mulf %24, %25 : vector<8x32xf32>
    %27 = vector.broadcast %6 : vector<1x32xf32> to vector<8x32xf32>
    %28 = arith.addf %26, %27 : vector<8x32xf32>
    %29 = arith.truncf %28 : vector<8x32xf32> to vector<8x32xbf16>
    %c0_12 = arith.constant 0 : index
    %c0_13 = arith.constant 0 : index
    %30 = vector.load %arg7[%c0_12, %c0_13] : memref<32x32xbf16, #tpu.memory_space<vmem>>, vector<32x32xbf16>
    %cst_14 = arith.constant dense<0.000000e+00> : vector<8x32xf32>
    %31 = tpu.matmul %29, %30, %cst_14 {dimension_numbers = #tpu.dot_dimension_numbers<[1], [0], [0], [1], [0, 0, 1, 1], [], []>} : vector<8x32xbf16>, vector<32x32xbf16>, vector<8x32xf32> -> vector<8x32xf32>
    %c0_15 = arith.constant 0 : index
    %c0_16 = arith.constant 0 : index
    %32 = vector.load %arg8[%c0_15, %c0_16] : memref<1x32xf32, #tpu.memory_space<vmem>>, vector<1x32xf32>
    %33 = vector.broadcast %32 : vector<1x32xf32> to vector<8x32xf32>
    %34 = arith.addf %31, %33 : vector<8x32xf32>
    %cst_17 = arith.constant 0.353553385 : f32
    %35 = vector.broadcast %cst_17 : f32 to vector<8x32xf32>
    %36 = arith.mulf %34, %35 : vector<8x32xf32>
    %37 = vector.extract_strided_slice %36 {offsets = [0, 0], sizes = [8, 8], strides = [1, 1]} : vector<8x32xf32> to vector<8x8xf32>
    %38 = vector.extract_strided_slice %36 {offsets = [0, 8], sizes = [8, 8], strides = [1, 1]} : vector<8x32xf32> to vector<8x8xf32>
    %39 = vector.extract_strided_slice %36 {offsets = [0, 16], sizes = [8, 8], strides = [1, 1]} : vector<8x32xf32> to vector<8x8xf32>
    %40 = vector.extract_strided_slice %36 {offsets = [0, 24], sizes = [8, 8], strides = [1, 1]} : vector<8x32xf32> to vector<8x8xf32>
    %41 = vector.shape_cast %37 : vector<8x8xf32> to vector<1x8x8xf32>
    %42 = vector.shape_cast %38 : vector<8x8xf32> to vector<1x8x8xf32>
    %43 = vector.shape_cast %39 : vector<8x8xf32> to vector<1x8x8xf32>
    %44 = vector.shape_cast %40 : vector<8x8xf32> to vector<1x8x8xf32>
    %45 = tpu.concatenate %41, %42, %43, %44 in 0 : vector<1x8x8xf32>, vector<1x8x8xf32>, vector<1x8x8xf32>, vector<1x8x8xf32> -> vector<4x8x8xf32>
    %46 = arith.truncf %45 : vector<4x8x8xf32> to vector<4x8x8xbf16>
    %c0_18 = arith.constant 0 : index
    %c0_19 = arith.constant 0 : index
    %c0_20 = arith.constant 0 : index
    %47 = vector.load %arg4[%c0_18, %c0_19, %c0_20] : memref<1x1x8xf32, #tpu.memory_space<vmem>>, vector<1x1x8xf32>
    %48 = vector.shape_cast %47 : vector<1x1x8xf32> to vector<1x8xf32>
    %cst_21 = arith.constant 0.000000e+00 : f32
    %49 = vector.broadcast %cst_21 : f32 to vector<1x8xf32>
    %50 = arith.cmpf oeq, %48, %49 : vector<1x8xf32>
    %cst_22 = arith.constant -1.000000e+09 : f32
    %cst_23 = arith.constant 0.000000e+00 : f32
    %51 = vector.broadcast %cst_22 : f32 to vector<1x8xf32>
    %52 = vector.broadcast %cst_23 : f32 to vector<1x8xf32>
    %53 = arith.select %50, %51, %52 : vector<1x8xi1>, vector<1x8xf32>
    %c0_24 = arith.constant 0 : index
    %c0_25 = arith.constant 0 : index
    %c0_26 = arith.constant 0 : index
    %54 = vector.load %arg22[%c0_24, %c0_25, %c0_26] : memref<4x8x8xbf16, #tpu.memory_space<vmem>>, vector<4x8x8xbf16>
    "tpu.trace_start"() <{level = 10 : i32, message = "hqd,hkd->hqk"}> : () -> ()
    %cst_27 = arith.constant dense<0.000000e+00> : vector<4x8x8xf32>
    %55 = tpu.matmul %46, %54, %cst_27 {dimension_numbers = #tpu.dot_dimension_numbers<[2], [2], [1], [1], [0, 0, 0, 1, 1, 1], [0], [0]>} : vector<4x8x8xbf16>, vector<4x8x8xbf16>, vector<4x8x8xf32> -> vector<4x8x8xf32>
    "tpu.trace_stop"() : () -> ()
    %56 = vector.shape_cast %53 : vector<1x8xf32> to vector<1x1x8xf32>
    %57 = vector.broadcast %56 : vector<1x1x8xf32> to vector<4x8x8xf32>
    %58 = arith.addf %55, %57 : vector<4x8x8xf32>
    %cst_28 = arith.constant dense<0xFF800000> : vector<4x8xf32>
    %59 = vector.multi_reduction <maximumf>, %58, %cst_28 [2] : vector<4x8x8xf32> to vector<4x8xf32>
    %60 = vector.shape_cast %59 : vector<4x8xf32> to vector<4x8x1xf32>
    %61 = vector.broadcast %60 : vector<4x8x1xf32> to vector<4x8x8xf32>
    %62 = arith.subf %58, %61 : vector<4x8x8xf32>
    %63 = math.exp %62 : vector<4x8x8xf32>
    %cst_29 = arith.constant dense<0.000000e+00> : vector<4x8xf32>
    %64 = vector.multi_reduction <add>, %63, %cst_29 [2] : vector<4x8x8xf32> to vector<4x8xf32>
    %65 = vector.shape_cast %64 : vector<4x8xf32> to vector<4x8x1xf32>
    %66 = tpu.reciprocal %65 {approx = true} : vector<4x8x1xf32> -> vector<4x8x1xf32>
    %67 = vector.broadcast %66 : vector<4x8x1xf32> to vector<4x8x8xf32>
    %68 = arith.mulf %63, %67 : vector<4x8x8xf32>
    %69 = arith.truncf %68 : vector<4x8x8xf32> to vector<4x8x8xbf16>
    %c0_30 = arith.constant 0 : index
    %c0_31 = arith.constant 0 : index
    %c0_32 = arith.constant 0 : index
    %70 = vector.load %arg23[%c0_30, %c0_31, %c0_32] : memref<4x8x8xbf16, #tpu.memory_space<vmem>>, vector<4x8x8xbf16>
    "tpu.trace_start"() <{level = 10 : i32, message = "hqk,hkd->hqd"}> : () -> ()
    %cst_33 = arith.constant dense<0.000000e+00> : vector<4x8x8xf32>
    %71 = tpu.matmul %69, %70, %cst_33 {dimension_numbers = #tpu.dot_dimension_numbers<[2], [1], [1], [2], [0, 0, 0, 1, 1, 2], [0], [0]>} : vector<4x8x8xbf16>, vector<4x8x8xbf16>, vector<4x8x8xf32> -> vector<4x8x8xf32>
    "tpu.trace_stop"() : () -> ()
    %72 = vector.extract_strided_slice %71 {offsets = [0, 0, 0], sizes = [1, 8, 8], strides = [1, 1, 1]} : vector<4x8x8xf32> to vector<1x8x8xf32>
    %73 = vector.shape_cast %72 : vector<1x8x8xf32> to vector<8x8xf32>
    %74 = vector.extract_strided_slice %71 {offsets = [1, 0, 0], sizes = [1, 8, 8], strides = [1, 1, 1]} : vector<4x8x8xf32> to vector<1x8x8xf32>
    %75 = vector.shape_cast %74 : vector<1x8x8xf32> to vector<8x8xf32>
    %76 = vector.extract_strided_slice %71 {offsets = [2, 0, 0], sizes = [1, 8, 8], strides = [1, 1, 1]} : vector<4x8x8xf32> to vector<1x8x8xf32>
    %77 = vector.shape_cast %76 : vector<1x8x8xf32> to vector<8x8xf32>
    %78 = vector.extract_strided_slice %71 {offsets = [3, 0, 0], sizes = [1, 8, 8], strides = [1, 1, 1]} : vector<4x8x8xf32> to vector<1x8x8xf32>
    %79 = vector.shape_cast %78 : vector<1x8x8xf32> to vector<8x8xf32>
    %80 = tpu.concatenate %73, %75, %77, %79 in 1 : vector<8x8xf32>, vector<8x8xf32>, vector<8x8xf32>, vector<8x8xf32> -> vector<8x32xf32>
    %81 = arith.truncf %80 : vector<8x32xf32> to vector<8x32xbf16>
    %c0_34 = arith.constant 0 : index
    %c0_35 = arith.constant 0 : index
    %82 = vector.load %arg13[%c0_34, %c0_35] : memref<32x32xbf16, #tpu.memory_space<vmem>>, vector<32x32xbf16>
    %cst_36 = arith.constant dense<0.000000e+00> : vector<8x32xf32>
    %83 = tpu.matmul %81, %82, %cst_36 {dimension_numbers = #tpu.dot_dimension_numbers<[1], [0], [0], [1], [0, 0, 1, 1], [], []>} : vector<8x32xbf16>, vector<32x32xbf16>, vector<8x32xf32> -> vector<8x32xf32>
    %c0_37 = arith.constant 0 : index
    %c0_38 = arith.constant 0 : index
    %84 = vector.load %arg14[%c0_37, %c0_38] : memref<1x32xf32, #tpu.memory_space<vmem>>, vector<1x32xf32>
    %85 = vector.broadcast %84 : vector<1x32xf32> to vector<8x32xf32>
    %86 = arith.addf %83, %85 : vector<8x32xf32>
    %87 = arith.addf %4, %86 : vector<8x32xf32>
    %c0_39 = arith.constant 0 : index
    %c0_40 = arith.constant 0 : index
    %88 = vector.load %arg15[%c0_39, %c0_40] : memref<1x32xf32, #tpu.memory_space<vmem>>, vector<1x32xf32>
    %c0_41 = arith.constant 0 : index
    %c0_42 = arith.constant 0 : index
    %89 = vector.load %arg16[%c0_41, %c0_42] : memref<1x32xf32, #tpu.memory_space<vmem>>, vector<1x32xf32>
    %cst_43 = arith.constant dense<0.000000e+00> : vector<8xf32>
    %90 = vector.multi_reduction <add>, %87, %cst_43 [1] : vector<8x32xf32> to vector<8xf32>
    %91 = vector.shape_cast %90 : vector<8xf32> to vector<8x1xf32>
    %cst_44 = arith.constant 3.200000e+01 : f32
    %92 = vector.broadcast %cst_44 : f32 to vector<8x1xf32>
    %93 = arith.divf %91, %92 : vector<8x1xf32>
    %94 = vector.broadcast %93 : vector<8x1xf32> to vector<8x32xf32>
    %95 = arith.subf %87, %94 : vector<8x32xf32>
    %96 = arith.mulf %95, %95 : vector<8x32xf32>
    %cst_45 = arith.constant dense<0.000000e+00> : vector<8xf32>
    %97 = vector.multi_reduction <add>, %96, %cst_45 [1] : vector<8x32xf32> to vector<8xf32>
    %98 = vector.shape_cast %97 : vector<8xf32> to vector<8x1xf32>
    %cst_46 = arith.constant 0.0322580636 : f32
    %99 = vector.broadcast %cst_46 : f32 to vector<8x1xf32>
    %100 = arith.mulf %98, %99 : vector<8x1xf32>
    %101 = math.sqrt %100 : vector<8x1xf32>
    %cst_47 = arith.constant 9.99999997E-7 : f32
    %102 = vector.broadcast %cst_47 : f32 to vector<8x1xf32>
    %103 = arith.addf %101, %102 : vector<8x1xf32>
    %cst_48 = arith.constant 1.000000e+00 : f32
    %104 = vector.broadcast %cst_48 : f32 to vector<8x1xf32>
    %105 = arith.divf %104, %103 : vector<8x1xf32>
    %106 = vector.broadcast %88 : vector<1x32xf32> to vector<8x32xf32>
    %107 = arith.mulf %106, %95 : vector<8x32xf32>
    %108 = vector.broadcast %105 : vector<8x1xf32> to vector<8x32xf32>
    %109 = arith.mulf %107, %108 : vector<8x32xf32>
    %110 = vector.broadcast %89 : vector<1x32xf32> to vector<8x32xf32>
    %111 = arith.addf %109, %110 : vector<8x32xf32>
    %112 = arith.truncf %111 : vector<8x32xf32> to vector<8x32xbf16>
    %c0_49 = arith.constant 0 : index
    %c0_50 = arith.constant 0 : index
    %113 = vector.load %arg17[%c0_49, %c0_50] : memref<32x64xbf16, #tpu.memory_space<vmem>>, vector<32x64xbf16>
    %cst_51 = arith.constant dense<0.000000e+00> : vector<8x64xf32>
    %114 = tpu.matmul %112, %113, %cst_51 {dimension_numbers = #tpu.dot_dimension_numbers<[1], [0], [0], [1], [0, 0, 1, 1], [], []>} : vector<8x32xbf16>, vector<32x64xbf16>, vector<8x64xf32> -> vector<8x64xf32>
    %c0_52 = arith.constant 0 : index
    %c0_53 = arith.constant 0 : index
    %115 = vector.load %arg18[%c0_52, %c0_53] : memref<1x64xf32, #tpu.memory_space<vmem>>, vector<1x64xf32>
    %116 = vector.broadcast %115 : vector<1x64xf32> to vector<8x64xf32>
    %117 = arith.addf %114, %116 : vector<8x64xf32>
    %cst_54 = arith.constant 0.000000e+00 : f32
    %118 = vector.broadcast %cst_54 : f32 to vector<8x64xf32>
    %119 = arith.maximumf %117, %118 : vector<8x64xf32>
    %120 = arith.truncf %119 : vector<8x64xf32> to vector<8x64xbf16>
    %c0_55 = arith.constant 0 : index
    %c0_56 = arith.constant 0 : index
    %121 = vector.load %arg19[%c0_55, %c0_56] : memref<64x32xbf16, #tpu.memory_space<vmem>>, vector<64x32xbf16>
    %cst_57 = arith.constant dense<0.000000e+00> : vector<8x32xf32>
    %122 = tpu.matmul %120, %121, %cst_57 {dimension_numbers = #tpu.dot_dimension_numbers<[1], [0], [0], [1], [0, 0, 1, 1], [], []>} : vector<8x64xbf16>, vector<64x32xbf16>, vector<8x32xf32> -> vector<8x32xf32>
    %c0_58 = arith.constant 0 : index
    %c0_59 = arith.constant 0 : index
    %123 = vector.load %arg20[%c0_58, %c0_59] : memref<1x32xf32, #tpu.memory_space<vmem>>, vector<1x32xf32>
    %124 = vector.broadcast %123 : vector<1x32xf32> to vector<8x32xf32>
    %125 = arith.addf %122, %124 : vector<8x32xf32>
    %126 = arith.addf %87, %125 : vector<8x32xf32>
    %c0_60 = arith.constant 0 : index
    %c0_61 = arith.constant 0 : index
    %c0_62 = arith.constant 0 : index
    %127 = vector.load %arg21[%c0_60, %c0_61, %c0_62] : memref<1x8x32xf32, #tpu.memory_space<vmem>>, vector<1x8x32xf32>
    %128 = vector.shape_cast %127 : vector<1x8x32xf32> to vector<8x32xf32>
    %129 = vector.shape_cast %126 : vector<8x32xf32> to vector<1x8x32xf32>
    tpu.vector_store %arg21[%c0_60, %c0_61, %c0_62], %129 {strides = array<i32>} : memref<1x8x32xf32, #tpu.memory_space<vmem>>, vector<1x8x32xf32>,
    return
  }
  func.func @transform_0(%arg0: i32, %arg1: i32) -> (i32, i32, i32) {
    %c0_i32 = arith.constant 0 : i32
    %c0_i32_0 = arith.constant 0 : i32
    %c0_i32_1 = arith.constant 0 : i32
    return %arg0, %c0_i32, %c0_i32_0 : i32, i32, i32
  }
  func.func @transform_1(%arg0: i32, %arg1: i32) -> (i32, i32, i32) {
    %c0_i32 = arith.constant 0 : i32
    %c0_i32_0 = arith.constant 0 : i32
    return %arg0, %arg1, %c0_i32 : i32, i32, i32
  }
  func.func @transform_2(%arg0: i32, %arg1: i32) -> (i32, i32, i32) {
    %c0_i32 = arith.constant 0 : i32
    %c0_i32_0 = arith.constant 0 : i32
    %c0_i32_1 = arith.constant 0 : i32
    return %arg0, %c0_i32, %c0_i32_0 : i32, i32, i32
  }
  func.func @transform_3(%arg0: i32, %arg1: i32) -> (i32, i32) {
    %c0_i32 = arith.constant 0 : i32
    %c0_i32_0 = arith.constant 0 : i32
    %c0_i32_1 = arith.constant 0 : i32
    return %c0_i32, %c0_i32_0 : i32, i32
  }
  func.func @transform_4(%arg0: i32, %arg1: i32) -> (i32, i32) {
    %c0_i32 = arith.constant 0 : i32
    %c0_i32_0 = arith.constant 0 : i32
    %c0_i32_1 = arith.constant 0 : i32
    return %c0_i32, %c0_i32_0 : i32, i32
  }
  func.func @transform_5(%arg0: i32, %arg1: i32) -> (i32, i32) {
    %c0_i32 = arith.constant 0 : i32
    %c0_i32_0 = arith.constant 0 : i32
    %c0_i32_1 = arith.constant 0 : i32
    return %c0_i32, %c0_i32_0 : i32, i32
  }
  func.func @transform_6(%arg0: i32, %arg1: i32) -> (i32, i32) {
    %c0_i32 = arith.constant 0 : i32
    %c0_i32_0 = arith.constant 0 : i32
    %c0_i32_1 = arith.constant 0 : i32
    return %c0_i32, %c0_i32_0 : i32, i32
  }
  func.func @transform_7(%arg0: i32, %arg1: i32) -> (i32, i32) {
    %c0_i32 = arith.constant 0 : i32
    %c0_i32_0 = arith.constant 0 : i32
    %c0_i32_1 = arith.constant 0 : i32
    return %c0_i32, %c0_i32_0 : i32, i32
  }
  func.func @transform_8(%arg0: i32, %arg1: i32) -> (i32, i32) {
    %c0_i32 = arith.constant 0 : i32
    %c0_i32_0 = arith.constant 0 : i32
    %c0_i32_1 = arith.constant 0 : i32
    return %c0_i32, %c0_i32_0 : i32, i32
  }
  func.func @transform_9(%arg0: i32, %arg1: i32) -> (i32, i32) {
    %c0_i32 = arith.constant 0 : i32
    %c0_i32_0 = arith.constant 0 : i32
    %c0_i32_1 = arith.constant 0 : i32
    return %c0_i32, %c0_i32_0 : i32, i32
  }
  func.func @transform_10(%arg0: i32, %arg1: i32) -> (i32, i32) {
    %c0_i32 = arith.constant 0 : i32
    %c0_i32_0 = arith.constant 0 : i32
    %c0_i32_1 = arith.constant 0 : i32
    return %c0_i32, %c0_i32_0 : i32, i32
  }
  func.func @transform_11(%arg0: i32, %arg1: i32) -> (i32, i32) {
    %c0_i32 = arith.constant 0 : i32
    %c0_i32_0 = arith.constant 0 : i32
    %c0_i32_1 = arith.constant 0 : i32
    return %c0_i32, %c0_i32_0 : i32, i32
  }
  func.func @transform_12(%arg0: i32, %arg1: i32) -> (i32, i32) {
    %c0_i32 = arith.constant 0 : i32
    %c0_i32_0 = arith.constant 0 : i32
    %c0_i32_1 = arith.constant 0 : i32
    return %c0_i32, %c0_i32_0 : i32, i32
  }
  func.func @transform_13(%arg0: i32, %arg1: i32) -> (i32, i32) {
    %c0_i32 = arith.constant 0 : i32
    %c0_i32_0 = arith.constant 0 : i32
    %c0_i32_1 = arith.constant 0 : i32
    return %c0_i32, %c0_i32_0 : i32, i32
  }
  func.func @transform_14(%arg0: i32, %arg1: i32) -> (i32, i32) {
    %c0_i32 = arith.constant 0 : i32
    %c0_i32_0 = arith.constant 0 : i32
    %c0_i32_1 = arith.constant 0 : i32
    return %c0_i32, %c0_i32_0 : i32, i32
  }
  func.func @transform_15(%arg0: i32, %arg1: i32) -> (i32, i32) {
    %c0_i32 = arith.constant 0 : i32
    %c0_i32_0 = arith.constant 0 : i32
    %c0_i32_1 = arith.constant 0 : i32
    return %c0_i32, %c0_i32_0 : i32, i32
  }
  func.func @transform_16(%arg0: i32, %arg1: i32) -> (i32, i32) {
    %c0_i32 = arith.constant 0 : i32
    %c0_i32_0 = arith.constant 0 : i32
    %c0_i32_1 = arith.constant 0 : i32
    return %c0_i32, %c0_i32_0 : i32, i32
  }
  func.func @transform_17(%arg0: i32, %arg1: i32) -> (i32, i32) {
    %c0_i32 = arith.constant 0 : i32
    %c0_i32_0 = arith.constant 0 : i32
    %c0_i32_1 = arith.constant 0 : i32
    return %c0_i32, %c0_i32_0 : i32, i32
  }
  func.func @transform_18(%arg0: i32, %arg1: i32) -> (i32, i32) {
    %c0_i32 = arith.constant 0 : i32
    %c0_i32_0 = arith.constant 0 : i32
    %c0_i32_1 = arith.constant 0 : i32
    return %c0_i32, %c0_i32_0 : i32, i32
  }
  func.func @transform_19(%arg0: i32, %arg1: i32) -> (i32, i32, i32) {
    %c0_i32 = arith.constant 0 : i32
    %c0_i32_0 = arith.constant 0 : i32
    return %arg0, %arg1, %c0_i32 : i32, i32, i32
  }
}

</mosaic_0001>

<bundles_post_ra>
// kernel: tpu_custom_call.1
= control target key start
LH: loop header
LB: loop body
LE: loop exit
PB: predicated region body
PF: predicated region fallthrough
CT: control target
= control target key end

     0   :  { %s4295_s0 = inlined_call_operand.hbm [shape: f32[2,8,32], index: 0, kind: input, shape index: {}]   ;;  %s4296_s1 = inlined_call_operand.hbm [shape: f32[2,8,32], index: 1, kind: input, shape index: {}]   ;;  %s4297_s2 = inlined_call_operand.hbm [shape: f32[2,1,8], index: 2, kind: input, shape index: {}]   ;;  %s4298_s3 = inlined_call_operand.hbm [shape: f32[1,32], index: 3, kind: input, shape index: {}]   ;;  %s4299_s4 = inlined_call_operand.hbm [shape: f32[1,32], index: 4, kind: input, shape index: {}]   ;;  %s4300_s5 = inlined_call_operand.hbm [shape: bf16[32,32], index: 5, kind: input, shape index: {}]   ;;  %s4301_s6 = inlined_call_operand.hbm [shape: f32[1,32], index: 6, kind: input, shape index: {}]   ;;  %s4302_s7 = inlined_call_operand.hbm [shape: bf16[32,32], index: 7, kind: input, shape index: {}]   ;;  %s4303_s8 = inlined_call_operand.hbm [shape: f32[1,32], index: 8, kind: input, shape index: {}]   ;;  %s4304_s9 = inlined_call_operand.hbm [shape: bf16[32,32], index: 9, kind: input, shape index: {}]   ;;  %s4305_s10 = inlined_call_operand.hbm [shape: f32[1,32], index: 10, kind: input, shape index: {}]   ;;  %s4306_s11 = inlined_call_operand.hbm [shape: bf16[32,32], index: 11, kind: input, shape index: {}]   ;;  %s4307_s12 = inlined_call_operand.hbm [shape: f32[1,32], index: 12, kind: input, shape index: {}]   ;;  %s4308_s13 = inlined_call_operand.hbm [shape: f32[1,32], index: 13, kind: input, shape index: {}]   ;;  %s4309_s14 = inlined_call_operand.hbm [shape: f32[1,32], index: 14, kind: input, shape index: {}]   ;;  %s4310_s15 = inlined_call_operand.hbm [shape: bf16[32,64], index: 15, kind: input, shape index: {}]   ;;  %s4311_s16 = inlined_call_operand.hbm [shape: f32[1,64], index: 16, kind: input, shape index: {}]   ;;  %s4312_s17 = inlined_call_operand.hbm [shape: bf16[64,32], index: 17, kind: input, shape index: {}]   ;;  %s4313_s18 = inlined_call_operand.hbm [shape: f32[1,32], index: 18, kind: input, shape index: {}]   ;;  %s4314_s19 = inlined_call_operand.hbm [shape: f32[2,8,32], index: 19, kind: output, shape index: {}]  }
   0x1   :  { %4347 = sst [smem:[#allocation49_spill]] %s4295_s0 }
   0x2   :  { %4348 = sst [smem:[#allocation50_spill]] %s4296_s1 }
   0x3   :  { %4349 = sst [smem:[#allocation51_spill]] %s4297_s2 }
   0x4   :  { %4350 = sst [smem:[#allocation52_spill]] %s4298_s3 }
   0x5   :  { %4351 = sst [smem:[#allocation53_spill]] %s4299_s4 }
   0x6   :  { %4352 = sst [smem:[#allocation54_spill]] %s4300_s5 }
   0x7   :  { %4353 = sst [smem:[#allocation55_spill]] %s4301_s6 }
   0x8   :  { %4354 = sst [smem:[#allocation56_spill]] %s4302_s7 }
   0x9   :  { %4355 = sst [smem:[#allocation57_spill]] %s4303_s8 }
   0xa   :  { %4356 = sst [smem:[#allocation58_spill]] %s4304_s9 }
   0xb   :  { %4357 = sst [smem:[#allocation59_spill]] %s4305_s10 }
   0xc   :  { %4358 = sst [smem:[#allocation60_spill]] %s4306_s11 }
   0xd   :  { %4359 = sst [smem:[#allocation61_spill]] %s4307_s12 }
   0xe   :  { %4360 = sst [smem:[#allocation62_spill]] %s4308_s13 }
   0xf   :  { %4361 = sst [smem:[#allocation63_spill]] %s4309_s14 }
  0x10   :  { %4362 = sst [smem:[#allocation64_spill]] %s4310_s15 }
  0x11   :  { %4363 = sst [smem:[#allocation65_spill]] %s4311_s16 }
  0x12   :  { %4364 = sst [smem:[#allocation66_spill]] %s4312_s17 }
  0x13   :  { %4365 = sst [smem:[#allocation67_spill]] %s4313_s18 }
  0x14   :  { %4366 = sst [smem:[#allocation68_spill]] %s4314_s19 }
  0x15   :  { %24 = vsyncpa [#allocation5], 0 }
  0x16   :  { %26 = vsyncpa [#allocation5 + $0x1], 0 }
  0x17   :  { %27 = vsyncpa [#allocation8], 0 }
  0x18   :  { %29 = vsyncpa [#allocation8 + $0x1], 0 }
  0x19   :  { %30 = vsyncpa [#allocation11], 0 }
  0x1a   :  { %31 = vsyncpa [#allocation14], 0 }
  0x1b   :  { %32 = vsyncpa [#allocation17], 0 }
  0x1c   :  { %33 = vsyncpa [#allocation20], 0 }
  0x1d   :  { %34 = vsyncpa [#allocation23], 0 }
  0x1e   :  { %35 = vsyncpa [#allocation26], 0 }
  0x1f   :  { %36 = vsyncpa [#allocation29], 0 }
  0x20   :  { %37 = vsyncpa [#allocation32], 0 }
  0x21   :  { %38 = vsyncpa [#allocation6], 0 }
  0x22   :  { %40 = vsyncpa [#allocation6 + $0x1], 0  ;;  %s3545_s0 = smov 0   ;;  %s3547_s30 = smov 0  }
  0x23   :  { %s3549_s20 = smov 0   ;;  %s3551_s21 = smov 0  }
  0x24   :  { %s3553_s1 = smov 0   ;;  %s3555_s22 = smov 0  }
  0x25 LB: > { %4367 = sst [smem:[#allocation46_spill]] %s3405_s21  ;;  %s3576_s2 = sadd.s32 4294967295, %s3413_s22   ;;  %s3413_s22 = sphi %s3555_s22, %s46_s22   ;;  %s3409_s1 = sphi %s3553_s1, %s4435_s1   ;;  %s3405_s21 = sphi %s3551_s21, %s4434_s21   ;;  %s3401_s20 = sphi %s3549_s20, %s4433_s20   ;;  %s3397_s30 = sphi %s3547_s30, %s4432_s30   ;;  %s3393_s0 = sphi %s3545_s0, %s4431_s0  }
  0x26   : > { %p2249_p0 = scmp.ge.s32.totalorder %s3413_s22, 1  ;;  %p4324_p1 = scmp.eq.s32.totalorder %s3576_s2, 0 }
  0x27   : > { %p507_p2 = scmp.lt.s32.totalorder %s3413_s22, 3  ;;  %s3415_s24 = smov [#allocation10]  }
  0x28   : > { %s520_s25 = sshll.u32 %s3415_s24, 4  ;;  %s3416_s3 = smov [#allocation13]   ;;  %s521_s25 = int_to_ptr.vmem [resolvable:$true] %s520_s25 }
  0x29   : > { %p3581_p3 = pnand %p2249_p0, %p507_p2  ;;  %s541_s26 = sshll.u32 %s3416_s3, 4  ;;  %s3594_s26 = int_to_ptr.vmem [resolvable:$true] %s541_s26 }
  0x2a   : > { %s3417_s28 = smov [#allocation16]   ;;  %s4371_s24 = sld [smem:[#allocation52_spill]] }
  0x2b   : > { %s4368_s23 = scalar_select %p3581_p3, 1, 0 }
  0x2c   : > { %p2544_p5 = pneg %p3581_p3  ;;  %s3596_s29 = sshll.u32 %s3417_s28, 4  ;;  %s566_s29 = int_to_ptr.vmem [resolvable:$true] %s3596_s29 }
  0x2d   : > { %4369 = sst [smem:[#allocation47_spill]] %s4368_s23 }
  0x2e   : > { %p3590_p6 = pnand %p2544_p5, %p4324_p1 }
  0x30   : > { %s4370_s27 = scalar_select %p3590_p6, 1, 0 }
  0x31   : > { %s2757_s18 = scalar_lea.hbm %s4371_s24, 16  ;;  %p3606_p8 = pneg %p3590_p6 }
  0x32   : > { %p2758_p7 = scmp.ne.s32.totalorder %s4371_s24, %s2757_s18  ;;  %p2764_p11 = scmp.lt.u32.totalorder %s2757_s18, %s4371_s24 }
  0x33   : > { %s4372_s3 = scalar_select %p3606_p8, 1, 0 }
  0x34   : > { %p2760_p9 = pnand %p3606_p8, %p2758_p7 }
  0x36   : > { %p2761_p10 = pneg %p2760_p9 }
  0x38   : > { %p2766_p12 = pnand %p2764_p11, %p2761_p10 }
  0x3a   : > { %2769 = shalt.err (!%p2766_p12)
}
  0x3b   : > { %s2770_s19 = scalar_lea.vmem %s521_s25, 16  ;;  %s2777_s16 = scalar_lea.vmem %s521_s25, 32 }
  0x3c   : > { %p2771_p13 = scmp.ne.s32.totalorder %s521_s25, %s2770_s19  ;;  %p2778_p5 = scmp.lt.s32.totalorder %s521_s25, %s521_s25 }
  0x3d   : > { %p2779_p4 = scmp.lt.s32.totalorder %s2777_s16, %s2770_s19 }
  0x3e   : > { %p2773_p0 = pnand %p2771_p13, %p3606_p8 }
  0x3f   : > { %p2780_p1 = por %p2779_p4, %p2778_p5 }
  0x40   : > { %p2774_p2 = pneg %p2773_p0 }
  0x42   : > { %p2781_p3 = pnand %p2780_p1, %p2774_p2 }
  0x44   : > { %2784 = shalt.err (!%p2781_p3)
}
  0x45   : > { %2547 = dma.hbm_to_vmem [thread:$0]  (!%p3590_p6), %s4371_s24, 16, %s521_s25, [#allocation11]  }
  0x46   : > { %s4373_s5 = sld [smem:[#allocation54_spill]] }
  0x4c   : > { %s2785_s28 = scalar_lea.hbm %s4373_s5, 256 }
  0x4d   : > { %p2786_p7 = scmp.ne.s32.totalorder %s4373_s5, %s2785_s28  ;;  %p2792_p1 = scmp.lt.u32.totalorder %s2785_s28, %s4373_s5 }
  0x4f   : > { %p2788_p9 = pnand %p2786_p7, %p3606_p8 }
  0x51   : > { %p2789_p4 = pneg %p2788_p9 }
  0x53   : > { %p2794_p3 = pnand %p2792_p1, %p2789_p4 }
  0x55   : > { %2797 = shalt.err (!%p2794_p3)
}
  0x56   : > { %s2798_s25 = scalar_lea.vmem %s3594_s26, 256  ;;  %p2806_p13 = scmp.lt.s32.totalorder %s3594_s26, %s3594_s26 }
  0x57   : > { %p2799_p10 = scmp.ne.s32.totalorder %s3594_s26, %s2798_s25  ;;  %p2807_p0 = scmp.lt.s32.totalorder %s2798_s25, %s2798_s25 }
  0x59   : > { %p2801_p11 = pnand %p2799_p10, %p3606_p8  ;;  %p2808_p2 = por %p2807_p0, %p2806_p13 }
  0x5b   : > { %p2802_p12 = pneg %p2801_p11 }
  0x5d   : > { %p2809_p5 = pnand %p2808_p2, %p2802_p12 }
  0x5f   : > { %2812 = shalt.err (!%p2809_p5)
}
  0x60   : > { %s3418_s10 = smov 64   ;;  %s3419_s12 = smov 4  }
  0x61   : > { %2553 = dma.hbm_to_vmem [thread:$0]  (!%p3590_p6), %s4373_s5, 256, %s3594_s26, [#allocation14], %s3418_s10, %s3418_s10, %s3419_s12  }
  0x62   : > { %s4374_s7 = sld [smem:[#allocation56_spill]] }
  0x68   : > { %s2813_s28 = scalar_lea.hbm %s4374_s7, 256 }
  0x69   : > { %p2814_p7 = scmp.ne.s32.totalorder %s4374_s7, %s2813_s28  ;;  %p2820_p1 = scmp.lt.u32.totalorder %s2813_s28, %s4374_s7 }
  0x6b   : > { %p2816_p9 = pnand %p2814_p7, %p3606_p8 }
  0x6d   : > { %p2817_p4 = pneg %p2816_p9 }
  0x6f   : > { %p2822_p3 = pnand %p2820_p1, %p2817_p4 }
  0x71   : > { %2825 = shalt.err (!%p2822_p3)
}
  0x72   : > { %s2826_s21 = scalar_lea.vmem %s566_s29, 256  ;;  %p2834_p13 = scmp.lt.s32.totalorder %s566_s29, %s566_s29 }
  0x73   : > { %p2827_p10 = scmp.ne.s32.totalorder %s566_s29, %s2826_s21  ;;  %p2835_p0 = scmp.lt.s32.totalorder %s2826_s21, %s2826_s21 }
  0x75   : > { %p2829_p11 = pnand %p2827_p10, %p3606_p8  ;;  %p2836_p2 = por %p2835_p0, %p2834_p13 }
  0x77   : > { %p2830_p12 = pneg %p2829_p11 }
  0x79   : > { %p2837_p5 = pnand %p2836_p2, %p2830_p12 }
  0x7b   : > { %2840 = shalt.err (!%p2837_p5)
}
  0x7c   : > { %2559 = dma.hbm_to_vmem [thread:$0]  (!%p3590_p6), %s4374_s7, 256, %s566_s29, [#allocation17], %s3418_s10, %s3418_s10, %s3419_s12  }
  0x7d   : > { %s3420_s23 = smov [#allocation19]   ;;  %s3421_s18 = smov [#allocation22]  }
  0x7e   : > { %s589_s14 = sshll.u32 %s3420_s23, 4  ;;  %s613_s28 = sshll.u32 %s3421_s18, 4  ;;  %s590_s14 = int_to_ptr.vmem [resolvable:$true] %s589_s14  ;;  %s614_s28 = int_to_ptr.vmem [resolvable:$true] %s613_s28 }
  0x7f   : > { %s4375_s9 = sld [smem:[#allocation58_spill]] }
  0x85   : > { %s2841_s25 = scalar_lea.hbm %s4375_s9, 256 }
  0x86   : > { %p2842_p7 = scmp.ne.s32.totalorder %s4375_s9, %s2841_s25  ;;  %p2848_p1 = scmp.lt.u32.totalorder %s2841_s25, %s4375_s9 }
  0x88   : > { %p2844_p9 = pnand %p2842_p7, %p3606_p8 }
  0x8a   : > { %p2845_p4 = pneg %p2844_p9 }
  0x8c   : > { %p2850_p3 = pnand %p2848_p1, %p2845_p4 }
  0x8e   : > { %2853 = shalt.err (!%p2850_p3)
}
  0x8f   : > { %s2854_s29 = scalar_lea.vmem %s590_s14, 256  ;;  %p2862_p13 = scmp.lt.s32.totalorder %s590_s14, %s590_s14 }
  0x90   : > { %p2855_p10 = scmp.ne.s32.totalorder %s590_s14, %s2854_s29  ;;  %p2863_p0 = scmp.lt.s32.totalorder %s2854_s29, %s2854_s29 }
  0x92   : > { %p2857_p11 = pnand %p2855_p10, %p3606_p8  ;;  %p2864_p2 = por %p2863_p0, %p2862_p13 }
  0x94   : > { %p2858_p12 = pneg %p2857_p11 }
  0x96   : > { %p2865_p5 = pnand %p2864_p2, %p2858_p12 }
  0x98   : > { %2868 = shalt.err (!%p2865_p5)
}
  0x99   : > { %2565 = dma.hbm_to_vmem [thread:$0]  (!%p3590_p6), %s4375_s9, 256, %s590_s14, [#allocation20], %s3418_s10, %s3418_s10, %s3419_s12  }
  0x9a   : > { %s4376_s11 = sld [smem:[#allocation60_spill]] }
  0xa0   : > { %s2869_s18 = scalar_lea.hbm %s4376_s11, 256 }
  0xa1   : > { %p2870_p7 = scmp.ne.s32.totalorder %s4376_s11, %s2869_s18  ;;  %p2876_p1 = scmp.lt.u32.totalorder %s2869_s18, %s4376_s11 }
  0xa3   : > { %p2872_p9 = pnand %p2870_p7, %p3606_p8 }
  0xa5   : > { %p2873_p4 = pneg %p2872_p9 }
  0xa7   : > { %p2878_p3 = pnand %p2876_p1, %p2873_p4 }
  0xa9   : > { %2881 = shalt.err (!%p2878_p3)
}
  0xaa   : > { %s2882_s26 = scalar_lea.vmem %s614_s28, 256  ;;  %p2890_p13 = scmp.lt.s32.totalorder %s614_s28, %s614_s28 }
  0xab   : > { %p2883_p10 = scmp.ne.s32.totalorder %s614_s28, %s2882_s26  ;;  %p2891_p0 = scmp.lt.s32.totalorder %s2882_s26, %s2882_s26 }
  0xad   : > { %p2885_p11 = pnand %p2883_p10, %p3606_p8  ;;  %p2892_p2 = por %p2891_p0, %p2890_p13 }
  0xaf   : > { %p2886_p12 = pneg %p2885_p11 }
  0xb1   : > { %p2893_p5 = pnand %p2892_p2, %p2886_p12 }
  0xb3   : > { %2896 = shalt.err (!%p2893_p5)
}
  0xb4   : > { %2571 = dma.hbm_to_vmem [thread:$0]  (!%p3590_p6), %s4376_s11, 256, %s614_s28, [#allocation23], %s3418_s10, %s3418_s10, %s3419_s12  }
  0xb5   : > { %s3422_s5 = smov [#allocation25]   ;;  %s3423_s24 = smov [#allocation28]  }
  0xb6   : > { %s638_s8 = sshll.u32 %s3422_s5, 4  ;;  %s659_s23 = sshll.u32 %s3423_s24, 4  ;;  %s639_s8 = int_to_ptr.vmem [resolvable:$true] %s638_s8  ;;  %s660_s23 = int_to_ptr.vmem [resolvable:$true] %s659_s23 }
  0xb7   : > { %s4377_s13 = sld [smem:[#allocation62_spill]] }
  0xbd   : > { %s2897_s16 = scalar_lea.hbm %s4377_s13, 16 }
  0xbe   : > { %p2898_p7 = scmp.ne.s32.totalorder %s4377_s13, %s2897_s16  ;;  %p2904_p1 = scmp.lt.u32.totalorder %s2897_s16, %s4377_s13 }
  0xc0   : > { %p2900_p9 = pnand %p2898_p7, %p3606_p8 }
  0xc2   : > { %p2901_p4 = pneg %p2900_p9 }
  0xc4   : > { %p2906_p3 = pnand %p2904_p1, %p2901_p4 }
  0xc6   : > { %2909 = shalt.err (!%p2906_p3)
}
  0xc7   : > { %s2910_s28 = scalar_lea.vmem %s639_s8, 16  ;;  %s2917_s29 = scalar_lea.vmem %s639_s8, 32 }
  0xc8   : > { %p2911_p10 = scmp.ne.s32.totalorder %s639_s8, %s2910_s28  ;;  %p2918_p13 = scmp.lt.s32.totalorder %s639_s8, %s639_s8 }
  0xc9   : > { %p2919_p0 = scmp.lt.s32.totalorder %s2917_s29, %s2910_s28 }
  0xca   : > { %p2913_p11 = pnand %p2911_p10, %p3606_p8 }
  0xcb   : > { %p2920_p2 = por %p2919_p0, %p2918_p13 }
  0xcc   : > { %p2914_p12 = pneg %p2913_p11 }
  0xce   : > { %p2921_p5 = pnand %p2920_p2, %p2914_p12 }
  0xd0   : > { %2924 = shalt.err (!%p2921_p5)
}
  0xd1   : > { %2577 = dma.hbm_to_vmem [thread:$0]  (!%p3590_p6), %s4377_s13, 16, %s639_s8, [#allocation26]  }
  0xd2   : > { %s4378_s15 = sld [smem:[#allocation64_spill]] }
  0xd8   : > { %s2925_s16 = scalar_lea.hbm %s4378_s15, 256 }
  0xd9   : > { %p2926_p7 = scmp.ne.s32.totalorder %s4378_s15, %s2925_s16  ;;  %p2932_p1 = scmp.lt.u32.totalorder %s2925_s16, %s4378_s15 }
  0xdb   : > { %p2928_p9 = pnand %p2926_p7, %p3606_p8 }
  0xdd   : > { %p2929_p4 = pneg %p2928_p9 }
  0xdf   : > { %p2934_p3 = pnand %p2932_p1, %p2929_p4 }
  0xe1   : > { %2937 = shalt.err (!%p2934_p3)
}
  0xe2   : > { %s2938_s28 = scalar_lea.vmem %s660_s23, 256  ;;  %p2946_p13 = scmp.lt.s32.totalorder %s660_s23, %s660_s23 }
  0xe3   : > { %p2939_p10 = scmp.ne.s32.totalorder %s660_s23, %s2938_s28  ;;  %p2947_p0 = scmp.lt.s32.totalorder %s2938_s28, %s2938_s28 }
  0xe5   : > { %p2941_p11 = pnand %p2939_p10, %p3606_p8  ;;  %p2948_p2 = por %p2947_p0, %p2946_p13 }
  0xe7   : > { %p2942_p12 = pneg %p2941_p11 }
  0xe9   : > { %p2949_p5 = pnand %p2948_p2, %p2942_p12 }
  0xeb   : > { %2952 = shalt.err (!%p2949_p5)
}
  0xec   : > { %2583 = dma.hbm_to_vmem [thread:$0]  (!%p3590_p6), %s4378_s15, 256, %s660_s23, [#allocation29], %s3418_s10, %s3418_s10, %s3419_s12  }
  0xed   : > { %s3424_s5 = smov [#allocation31]   ;;  %s4379_s17 = sld [smem:[#allocation66_spill]] }
  0xee   : > { %s683_s24 = sshll.u32 %s3424_s5, 4  ;;  %s684_s24 = int_to_ptr.vmem [resolvable:$true] %s683_s24 }
  0xf3   : > { %s2953_s16 = scalar_lea.hbm %s4379_s17, 512 }
  0xf4   : > { %p2954_p7 = scmp.ne.s32.totalorder %s4379_s17, %s2953_s16  ;;  %p2960_p1 = scmp.lt.u32.totalorder %s2953_s16, %s4379_s17 }
  0xf6   : > { %p2956_p9 = pnand %p2954_p7, %p3606_p8 }
  0xf8   : > { %p2957_p4 = pneg %p2956_p9 }
  0xfa   : > { %p2962_p3 = pnand %p2960_p1, %p2957_p4 }
  0xfc   : > { %2965 = shalt.err (!%p2962_p3)
}
  0xfd   : > { %s2966_s23 = scalar_lea.vmem %s684_s24, 512  ;;  %p2974_p13 = scmp.lt.s32.totalorder %s684_s24, %s684_s24 }
  0xfe   : > { %p2967_p10 = scmp.ne.s32.totalorder %s684_s24, %s2966_s23  ;;  %p2975_p0 = scmp.lt.s32.totalorder %s2966_s23, %s2966_s23 }
 0x100   : > { %p2969_p11 = pnand %p2967_p10, %p3606_p8  ;;  %p2976_p2 = por %p2975_p0, %p2974_p13 }
 0x102   : > { %p2970_p12 = pneg %p2969_p11 }
 0x104   : > { %p2977_p5 = pnand %p2976_p2, %p2970_p12 }
 0x106   : > { %2980 = shalt.err (!%p2977_p5)
}
 0x107   : > { %2589 = dma.hbm_to_vmem [thread:$0]  (!%p3590_p6), %s4379_s17, 512, %s684_s24, [#allocation32], %s3418_s10, %s3418_s10, %s3419_s12  }
 0x108   : > { %s2248_s29 = sadd.s32 4294967294, %s3413_s22   ;;  %s58_s5 = sadd.s32 1, %s3409_s1 }
 0x109   : > { %p60_p7 = scmp.ge.s32.totalorder %s58_s5, 2  ;;  %s65_s18 = sadd.s32 1, %s3401_s20 }
 0x10a   : > { %p72_p9 = scmp.ne.s32.totalorder %s3401_s20, %s3397_s30  ;;  %p73_p4 = scmp.eq.s32.totalorder %s3413_s22, 0 }
 0x10b   : > { %s4437_s5 = smov (%p60_p7, %s58_s5), 0  ;;  %p78_p3 = scmp.ne.s32.totalorder %s3397_s30, %s3393_s0 }
 0x10c   : > { %4380 = sst [smem:[#allocation48_spill]] %s4437_s5  ;;  %p3780_p1 = por %p73_p4, %p72_p9 }
 0x10d   : > { %s62_s10 = ssub.s32 %s3409_s1, %s4437_s5  ;;  %p494_p10 = scmp.eq.s32.totalorder %s3576_s2, 1 }
 0x10e   : > { %p63_p11 = scmp.eq.s32.totalorder %s62_s10, 0  ;;  %p4382_p12 = scmp.eq.s32.totalorder %s3576_s2, 0 }
 0x10f   : > { %p3795_p0 = por %p494_p10, %p72_p9  ;;  %p500_p2 = scmp.eq.s32.totalorder %s2248_s29, 1 }
 0x110   : > { %p3791_p13 = por %p4382_p12, %p78_p3  ;;  %p2623_p7 = scmp.lt.s32.totalorder %s3413_s22, 2 }
 0x111   : > { %s4384_s24 = scalar_select %p3795_p0, 1, 0 }
 0x112   : > { %s4383_s12 = scalar_select %p3791_p13, 1, 0 }
 0x113   : > { %s3800_s16 = scalar_select %p63_p11, %s3401_s20, %s65_s18  }
 0x114   : > { %p3802_p5 = por %p500_p2, %p78_p3  ;;  %s3808_s21 = sand.u32 1, %s3401_s20  }
 0x115   : > { %s4331_s26 = sshll.u32 %s3409_s1, 7  ;;  %s4330_s14 = sshll.u32 %s3808_s21, 3 }
 0x116   : > { %s4385_s25 = scalar_select %p3802_p5, 1, 0 }
 0x117   : > { %p3814_p4 = pnand %p2623_p7, %p3780_p1  ;;  %s726_s28 = sand.u32 1, %s3413_s22  }
 0x118   : > { %s4387_s18 = sld [smem:[#allocation50_spill]]  ;;  %s730_s7 = scalar_lea.vmem [#allocation7], %s4330_s14 }
 0x119   : > { %s4386_s23 = scalar_select %p3814_p4, 1, 0 }
 0x11a   : > { %s738_s9 = sshll.u32 %s730_s7, 4  ;;  %s3830_s19 = scalar_lea.sflag [#allocation8], %s726_s28  ;;  %s3828_s9 = int_to_ptr.vmem [resolvable:$true] %s738_s9 }
 0x11b   : > { %p3836_p1 = pneg %p3814_p4 }
 0x11d   : > { %s4388_s13 = scalar_select %p3836_p1, 1, 0 }
 0x11e   : > { %s3824_s10 = scalar_lea.hbm %s4387_s18, %s4331_s26  ;;  %s2986_s14 = scalar_lea.hbm %s4387_s18, 256 }
 0x11f   : > { %s2981_s11 = scalar_lea.hbm %s3824_s10, 128  ;;  %p2987_p11 = scmp.lt.u32.totalorder %s3824_s10, %s4387_s18 }
 0x120   : > { %p2982_p9 = scmp.ne.s32.totalorder %s3824_s10, %s2981_s11  ;;  %p2988_p12 = scmp.lt.u32.totalorder %s2986_s14, %s2981_s11 }
 0x121   : > { %p2990_p7 = scmp.lt.u32.totalorder %s2981_s11, %s3824_s10 }
 0x122   : > { %p2984_p3 = pnand %p3836_p1, %p2982_p9  ;;  %p2989_p2 = por %p2988_p12, %p2987_p11 }
 0x124   : > { %p2985_p10 = pneg %p2984_p3  ;;  %p2991_p5 = por %p2990_p7, %p2989_p2 }
 0x126   : > { %p2992_p0 = pnand %p2991_p5, %p2985_p10 }
 0x128   : > { %2995 = shalt.err (!%p2992_p0)
}
 0x129   : > { %s2996_s28 = scalar_lea.vmem %s3828_s9, 128  ;;  %s3425_s8 = smov [#allocation7]  }
 0x12a   : > { %p2997_p9 = scmp.ne.s32.totalorder %s3828_s9, %s2996_s28  ;;  %s3001_s29 = sshll.u32 %s3425_s8, 4  ;;  %s3002_s29 = int_to_ptr.vmem [resolvable:$false] %s3001_s29 }
 0x12b   : > { %s3003_s26 = scalar_lea.vmem %s3002_s29, 256  ;;  %p3004_p6 = scmp.lt.s32.totalorder %s3828_s9, %s3002_s29 }
 0x12c   : > { %p2999_p3 = pnand %p2997_p9, %p3836_p1  ;;  %p3005_p8 = scmp.lt.s32.totalorder %s3003_s26, %s2996_s28 }
 0x12e   : > { %p3000_p13 = pneg %p2999_p3  ;;  %p3006_p11 = por %p3005_p8, %p3004_p6 }
 0x130   : > { %p3007_p12 = pnand %p3006_p11, %p3000_p13 }
 0x132   : > { %3010 = shalt.err (!%p3007_p12)
}
 0x133   : > { %2599 = dma.hbm_to_vmem [thread:$0]  (!%p3814_p4), %s3824_s10, 128, %s3828_s9, %s3830_s19  }
 0x134   : > { %s3426_s11 = smov [#allocation12]   ;;  %s3427_s7 = smov [#allocation15]  }
 0x135   : > { %s531_s14 = sshll.u32 %s3426_s11, 4  ;;  %s555_s15 = sshll.u32 %s3427_s7, 4  ;;  %s532_s14 = int_to_ptr.vmem [resolvable:$true] %s531_s14  ;;  %s556_s15 = int_to_ptr.vmem [resolvable:$true] %s555_s15 }
 0x136   : > { %s4389_s4 = sld [smem:[#allocation53_spill]]  ;;  %p4390_p8 = scmp.ne.s32.totalorder %s4372_s3, 0 }
 0x13c   : > { %s3011_s29 = scalar_lea.hbm %s4389_s4, 16 }
 0x13d   : > { %p3012_p6 = scmp.ne.s32.totalorder %s4389_s4, %s3011_s29  ;;  %p3018_p5 = scmp.lt.u32.totalorder %s3011_s29, %s4389_s4 }
 0x13f   : > { %p3014_p13 = pnand %p3012_p6, %p4390_p8 }
 0x141   : > { %p3015_p0 = pneg %p3014_p13 }
 0x143   : > { %p3020_p10 = pnand %p3018_p5, %p3015_p0 }
 0x145   : > { %3023 = shalt.err (!%p3020_p10)
}
 0x146   : > { %s3024_s9 = scalar_lea.vmem %s532_s14, 16  ;;  %s3031_s17 = scalar_lea.vmem %s532_s14, 32 }
 0x147   : > { %p3025_p2 = scmp.ne.s32.totalorder %s532_s14, %s3024_s9  ;;  %p3032_p3 = scmp.lt.s32.totalorder %s532_s14, %s532_s14 }
 0x148   : > { %p3033_p11 = scmp.lt.s32.totalorder %s3031_s17, %s3024_s9 }
 0x149   : > { %p3027_p7 = pnand %p3025_p2, %p4390_p8 }
 0x14a   : > { %p3034_p12 = por %p3033_p11, %p3032_p3 }
 0x14b   : > { %p3028_p9 = pneg %p3027_p7 }
 0x14d   : > { %p3035_p4 = pnand %p3034_p12, %p3028_p9 }
 0x14f   : > { %3038 = shalt.err (!%p3035_p4)
}
 0x150   : > { %p4391_p6 = scmp.ne.s32.totalorder %s4370_s27, 0  ;;  %s4392_s6 = sld [smem:[#allocation55_spill]] }
 0x152   : > { %2550 = dma.hbm_to_vmem [thread:$0]  (!%p4391_p6), %s4389_s4, 16, %s532_s14, [#allocation11]  }
 0x156   : > { %s3039_s7 = scalar_lea.hbm %s4392_s6, 16 }
 0x157   : > { %p3040_p13 = scmp.ne.s32.totalorder %s4392_s6, %s3039_s7  ;;  %p3046_p4 = scmp.lt.u32.totalorder %s3039_s7, %s4392_s6 }
 0x159   : > { %p3042_p0 = pnand %p3040_p13, %p4390_p8 }
 0x15b   : > { %p3043_p5 = pneg %p3042_p0 }
 0x15d   : > { %p3048_p10 = pnand %p3046_p4, %p3043_p5 }
 0x15f   : > { %3051 = shalt.err (!%p3048_p10)
}
 0x160   : > { %s3052_s9 = scalar_lea.vmem %s556_s15, 16  ;;  %s3059_s14 = scalar_lea.vmem %s556_s15, 32 }
 0x161   : > { %p3053_p2 = scmp.ne.s32.totalorder %s556_s15, %s3052_s9  ;;  %p3060_p3 = scmp.lt.s32.totalorder %s556_s15, %s556_s15 }
 0x162   : > { %p3061_p11 = scmp.lt.s32.totalorder %s3059_s14, %s3052_s9 }
 0x163   : > { %p3055_p7 = pnand %p3053_p2, %p4390_p8 }
 0x164   : > { %p3062_p12 = por %p3061_p11, %p3060_p3 }
 0x165   : > { %p3056_p9 = pneg %p3055_p7 }
 0x167   : > { %p3063_p1 = pnand %p3062_p12, %p3056_p9 }
 0x169   : > { %3066 = shalt.err (!%p3063_p1)
}
 0x16a   : > { %2556 = dma.hbm_to_vmem [thread:$0]  (!%p4391_p6), %s4392_s6, 16, %s556_s15, [#allocation14]  }
 0x16b   : > { %s3428_s11 = smov [#allocation18]   ;;  %s3429_s18 = smov [#allocation21]  }
 0x16c   : > { %s579_s5 = sshll.u32 %s3428_s11, 4  ;;  %s603_s7 = sshll.u32 %s3429_s18, 4  ;;  %s580_s5 = int_to_ptr.vmem [resolvable:$true] %s579_s5  ;;  %s604_s7 = int_to_ptr.vmem [resolvable:$true] %s603_s7 }
 0x16d   : > { %s4393_s28 = sld [smem:[#allocation57_spill]] }
 0x173   : > { %s3067_s26 = scalar_lea.hbm %s4393_s28, 16 }
 0x174   : > { %p3068_p1 = scmp.ne.s32.totalorder %s4393_s28, %s3067_s26  ;;  %p3074_p5 = scmp.lt.u32.totalorder %s3067_s26, %s4393_s28 }
 0x176   : > { %p3070_p13 = pnand %p3068_p1, %p4390_p8 }
 0x178   : > { %p3071_p0 = pneg %p3070_p13 }
 0x17a   : > { %p3076_p4 = pnand %p3074_p5, %p3071_p0 }
 0x17c   : > { %3079 = shalt.err (!%p3076_p4)
}
 0x17d   : > { %s3080_s15 = scalar_lea.vmem %s580_s5, 16  ;;  %s3087_s10 = scalar_lea.vmem %s580_s5, 32 }
 0x17e   : > { %p3081_p10 = scmp.ne.s32.totalorder %s580_s5, %s3080_s15  ;;  %p3088_p9 = scmp.lt.s32.totalorder %s580_s5, %s580_s5 }
 0x17f   : > { %p3089_p3 = scmp.lt.s32.totalorder %s3087_s10, %s3080_s15 }
 0x180   : > { %p3083_p2 = pnand %p3081_p10, %p4390_p8 }
 0x181   : > { %p3090_p11 = por %p3089_p3, %p3088_p9 }
 0x182   : > { %p3084_p7 = pneg %p3083_p2 }
 0x184   : > { %p3091_p12 = pnand %p3090_p11, %p3084_p7 }
 0x186   : > { %3094 = shalt.err (!%p3091_p12)
}
 0x187   : > { %2562 = dma.hbm_to_vmem [thread:$0]  (!%p4391_p6), %s4393_s28, 16, %s580_s5, [#allocation17]  }
 0x188   : > { %s4394_s29 = sld [smem:[#allocation59_spill]] }
 0x18e   : > { %s3095_s26 = scalar_lea.hbm %s4394_s29, 16 }
 0x18f   : > { %p3096_p1 = scmp.ne.s32.totalorder %s4394_s29, %s3095_s26  ;;  %p3102_p5 = scmp.lt.u32.totalorder %s3095_s26, %s4394_s29 }
 0x191   : > { %p3098_p13 = pnand %p3096_p1, %p4390_p8 }
 0x193   : > { %p3099_p0 = pneg %p3098_p13 }
 0x195   : > { %p3104_p4 = pnand %p3102_p5, %p3099_p0 }
 0x197   : > { %3107 = shalt.err (!%p3104_p4)
}
 0x198   : > { %s3108_s10 = scalar_lea.vmem %s604_s7, 16  ;;  %s3115_s5 = scalar_lea.vmem %s604_s7, 32 }
 0x199   : > { %p3109_p10 = scmp.ne.s32.totalorder %s604_s7, %s3108_s10  ;;  %p3116_p9 = scmp.lt.s32.totalorder %s604_s7, %s604_s7 }
 0x19a   : > { %p3117_p3 = scmp.lt.s32.totalorder %s3115_s5, %s3108_s10 }
 0x19b   : > { %p3111_p2 = pnand %p3109_p10, %p4390_p8 }
 0x19c   : > { %p3118_p11 = por %p3117_p3, %p3116_p9 }
 0x19d   : > { %p3112_p7 = pneg %p3111_p2 }
 0x19f   : > { %p3119_p12 = pnand %p3118_p11, %p3112_p7 }
 0x1a1   : > { %3122 = shalt.err (!%p3119_p12)
}
 0x1a2   : > { %2568 = dma.hbm_to_vmem [thread:$0]  (!%p4391_p6), %s4394_s29, 16, %s604_s7, [#allocation20]  }
 0x1a3   : > { %s3430_s4 = smov [#allocation24]   ;;  %s3431_s26 = smov [#allocation27]  }
 0x1a4   : > { %s627_s8 = sshll.u32 %s3430_s4, 4  ;;  %s649_s9 = sshll.u32 %s3431_s26, 4  ;;  %s628_s8 = int_to_ptr.vmem [resolvable:$true] %s627_s8  ;;  %s650_s9 = int_to_ptr.vmem [resolvable:$true] %s649_s9 }
 0x1a5   : > { %s4395_s15 = sld [smem:[#allocation61_spill]] }
 0x1ab   : > { %s3123_s6 = scalar_lea.hbm %s4395_s15, 16 }
 0x1ac   : > { %p3124_p1 = scmp.ne.s32.totalorder %s4395_s15, %s3123_s6  ;;  %p3130_p5 = scmp.lt.u32.totalorder %s3123_s6, %s4395_s15 }
 0x1ae   : > { %p3126_p13 = pnand %p3124_p1, %p4390_p8 }
 0x1b0   : > { %p3127_p0 = pneg %p3126_p13 }
 0x1b2   : > { %p3132_p4 = pnand %p3130_p5, %p3127_p0 }
 0x1b4   : > { %3135 = shalt.err (!%p3132_p4)
}
 0x1b5   : > { %s3136_s7 = scalar_lea.vmem %s628_s8, 16  ;;  %s3143_s18 = scalar_lea.vmem %s628_s8, 32 }
 0x1b6   : > { %p3137_p10 = scmp.ne.s32.totalorder %s628_s8, %s3136_s7  ;;  %p3144_p9 = scmp.lt.s32.totalorder %s628_s8, %s628_s8 }
 0x1b7   : > { %p3145_p3 = scmp.lt.s32.totalorder %s3143_s18, %s3136_s7 }
 0x1b8   : > { %p3139_p2 = pnand %p3137_p10, %p4390_p8 }
 0x1b9   : > { %p3146_p11 = por %p3145_p3, %p3144_p9 }
 0x1ba   : > { %p3140_p7 = pneg %p3139_p2 }
 0x1bc   : > { %p3147_p12 = pnand %p3146_p11, %p3140_p7 }
 0x1be   : > { %3150 = shalt.err (!%p3147_p12)
}
 0x1bf   : > { %2574 = dma.hbm_to_vmem [thread:$0]  (!%p4391_p6), %s4395_s15, 16, %s628_s8, [#allocation23]  }
 0x1c0   : > { %s4396_s14 = sld [smem:[#allocation63_spill]] }
 0x1c6   : > { %s3151_s17 = scalar_lea.hbm %s4396_s14, 16 }
 0x1c7   : > { %p3152_p1 = scmp.ne.s32.totalorder %s4396_s14, %s3151_s17  ;;  %p3158_p5 = scmp.lt.u32.totalorder %s3151_s17, %s4396_s14 }
 0x1c9   : > { %p3154_p13 = pnand %p3152_p1, %p4390_p8 }
 0x1cb   : > { %p3155_p0 = pneg %p3154_p13 }
 0x1cd   : > { %p3160_p4 = pnand %p3158_p5, %p3155_p0 }
 0x1cf   : > { %3163 = shalt.err (!%p3160_p4)
}
 0x1d0   : > { %s3164_s18 = scalar_lea.vmem %s650_s9, 16  ;;  %s3171_s8 = scalar_lea.vmem %s650_s9, 32 }
 0x1d1   : > { %p3165_p10 = scmp.ne.s32.totalorder %s650_s9, %s3164_s18  ;;  %p3172_p9 = scmp.lt.s32.totalorder %s650_s9, %s650_s9 }
 0x1d2   : > { %p3173_p3 = scmp.lt.s32.totalorder %s3171_s8, %s3164_s18 }
 0x1d3   : > { %p3167_p2 = pnand %p3165_p10, %p4390_p8 }
 0x1d4   : > { %p3174_p11 = por %p3173_p3, %p3172_p9 }
 0x1d5   : > { %p3168_p7 = pneg %p3167_p2 }
 0x1d7   : > { %p3175_p12 = pnand %p3174_p11, %p3168_p7 }
 0x1d9   : > { %3178 = shalt.err (!%p3175_p12)
}
 0x1da   : > { %2580 = dma.hbm_to_vmem [thread:$0]  (!%p4391_p6), %s4396_s14, 16, %s650_s9, [#allocation26]  }
 0x1db   : > { %s3432_s6 = smov [#allocation30]   ;;  %s3433_s17 = smov [#allocation33]  }
 0x1dc   : > { %s673_s28 = sshll.u32 %s3432_s6, 4  ;;  %s697_s10 = sshll.u32 %s3433_s17, 4  ;;  %s674_s28 = int_to_ptr.vmem [resolvable:$true] %s673_s28  ;;  %s698_s10 = int_to_ptr.vmem [resolvable:$true] %s697_s10 }
 0x1dd   : > { %s4397_s7 = sld [smem:[#allocation65_spill]] }
 0x1e3   : > { %s3179_s15 = scalar_lea.hbm %s4397_s7, 16 }
 0x1e4   : > { %p3180_p1 = scmp.ne.s32.totalorder %s4397_s7, %s3179_s15  ;;  %p3186_p5 = scmp.lt.u32.totalorder %s3179_s15, %s4397_s7 }
 0x1e6   : > { %p3182_p13 = pnand %p3180_p1, %p4390_p8 }
 0x1e8   : > { %p3183_p0 = pneg %p3182_p13 }
 0x1ea   : > { %p3188_p4 = pnand %p3186_p5, %p3183_p0 }
 0x1ec   : > { %3191 = shalt.err (!%p3188_p4)
}
 0x1ed   : > { %s3192_s9 = scalar_lea.vmem %s674_s28, 16  ;;  %s3199_s26 = scalar_lea.vmem %s674_s28, 32 }
 0x1ee   : > { %p3193_p10 = scmp.ne.s32.totalorder %s674_s28, %s3192_s9  ;;  %p3200_p9 = scmp.lt.s32.totalorder %s674_s28, %s674_s28 }
 0x1ef   : > { %p3201_p3 = scmp.lt.s32.totalorder %s3199_s26, %s3192_s9 }
 0x1f0   : > { %p3195_p2 = pnand %p3193_p10, %p4390_p8 }
 0x1f1   : > { %p3202_p11 = por %p3201_p3, %p3200_p9 }
 0x1f2   : > { %p3196_p7 = pneg %p3195_p2 }
 0x1f4   : > { %p3203_p12 = pnand %p3202_p11, %p3196_p7 }
 0x1f6   : > { %3206 = shalt.err (!%p3203_p12)
}
 0x1f7   : > { %2586 = dma.hbm_to_vmem [thread:$0]  (!%p4391_p6), %s4397_s7, 16, %s674_s28, [#allocation29]  }
 0x1f8   : > { %s4398_s5 = sld [smem:[#allocation67_spill]] }
 0x1fe   : > { %s3207_s11 = scalar_lea.hbm %s4398_s5, 16 }
 0x1ff   : > { %p3208_p1 = scmp.ne.s32.totalorder %s4398_s5, %s3207_s11  ;;  %p3214_p5 = scmp.lt.u32.totalorder %s3207_s11, %s4398_s5 }
 0x201   : > { %p3210_p13 = pnand %p3208_p1, %p4390_p8 }
 0x203   : > { %p3211_p0 = pneg %p3210_p13 }
 0x205   : > { %p3216_p4 = pnand %p3214_p5, %p3211_p0 }
 0x207   : > { %3219 = shalt.err (!%p3216_p4)
}
 0x208   : > { %s3220_s26 = scalar_lea.vmem %s698_s10, 16  ;;  %s3227_s28 = scalar_lea.vmem %s698_s10, 32 }
 0x209   : > { %p3221_p10 = scmp.ne.s32.totalorder %s698_s10, %s3220_s26  ;;  %p3228_p9 = scmp.lt.s32.totalorder %s698_s10, %s698_s10 }
 0x20a   : > { %p3229_p3 = scmp.lt.s32.totalorder %s3227_s28, %s3220_s26 }
 0x20b   : > { %p3223_p2 = pnand %p3221_p10, %p4390_p8 }
 0x20c   : > { %p3230_p11 = por %p3229_p3, %p3228_p9 }
 0x20d   : > { %p3224_p7 = pneg %p3223_p2 }
 0x20f   : > { %p3231_p12 = pnand %p3230_p11, %p3224_p7 }
 0x211   : > { %3234 = shalt.err (!%p3231_p12)
}
 0x212   : > { %2592 = dma.hbm_to_vmem [thread:$0]  (!%p4391_p6), %s4398_s5, 16, %s698_s10, [#allocation32]  }
 0x213   : > { %s4399_s3 = sshll.u32 %s3409_s1, 7  ;;  %s4400_s11 = sld [smem:[#allocation49_spill]] }
 0x214   : > { %s4401_s8 = sshll.u32 %s3808_s21, 3  ;;  %s2271_s9 = sshll.u32 %s3409_s1, 4 }
 0x215   : > { %s712_s27 = scalar_lea.vmem [#allocation4], %s4401_s8  ;;  %s709_s26 = scalar_lea.sflag [#allocation5], %s3808_s21 }
 0x216   : > { %s719_s4 = sshll.u32 %s712_s27, 4  ;;  %p4402_p6 = scmp.ne.s32.totalorder %s4388_s13, 0  ;;  %s4013_s4 = int_to_ptr.vmem [resolvable:$true] %s719_s4 }
 0x219   : > { %s4009_s18 = scalar_lea.hbm %s4400_s11, %s4399_s3  ;;  %s3240_s17 = scalar_lea.hbm %s4400_s11, 256 }
 0x21a   : > { %s3235_s28 = scalar_lea.hbm %s4009_s18, 128  ;;  %p3241_p0 = scmp.lt.u32.totalorder %s4009_s18, %s4400_s11 }
 0x21b   : > { %p3236_p8 = scmp.ne.s32.totalorder %s4009_s18, %s3235_s28  ;;  %p3242_p5 = scmp.lt.u32.totalorder %s3240_s17, %s3235_s28 }
 0x21c   : > { %p3244_p10 = scmp.lt.u32.totalorder %s3235_s28, %s4009_s18 }
 0x21d   : > { %p3238_p1 = pnand %p3236_p8, %p4402_p6  ;;  %p3243_p4 = por %p3242_p5, %p3241_p0 }
 0x21f   : > { %p3239_p13 = pneg %p3238_p1  ;;  %p3245_p2 = por %p3244_p10, %p3243_p4 }
 0x221   : > { %p3246_p7 = pnand %p3245_p2, %p3239_p13 }
 0x223   : > { %3249 = shalt.err (!%p3246_p7)
}
 0x224   : > { %s3250_s15 = scalar_lea.vmem %s4013_s4, 128  ;;  %s3434_s8 = smov [#allocation4]  }
 0x225   : > { %p3251_p9 = scmp.ne.s32.totalorder %s4013_s4, %s3250_s15  ;;  %s3255_s27 = sshll.u32 %s3434_s8, 4  ;;  %s3256_s27 = int_to_ptr.vmem [resolvable:$false] %s3255_s27 }
 0x226   : > { %s3257_s10 = scalar_lea.vmem %s3256_s27, 256  ;;  %p3258_p12 = scmp.lt.s32.totalorder %s4013_s4, %s3256_s27 }
 0x227   : > { %p3253_p3 = pnand %p3251_p9, %p4402_p6  ;;  %p3259_p8 = scmp.lt.s32.totalorder %s3257_s10, %s3250_s15 }
 0x229   : > { %p3254_p11 = pneg %p3253_p3  ;;  %p3260_p1 = por %p3259_p8, %p3258_p12 }
 0x22b   : > { %p3261_p0 = pnand %p3260_p1, %p3254_p11 }
 0x22d   : > { %3264 = shalt.err (!%p3261_p0)
}
 0x22e   : > { %p4403_p13 = scmp.ne.s32.totalorder %s4386_s23, 0  ;;  %s4404_s17 = sld [smem:[#allocation51_spill]] }
 0x22f   : > { %s748_s29 = scalar_lea.vmem [#allocation9], %s3808_s21 }
 0x230   : > { %2596 = dma.hbm_to_vmem [thread:$0]  (!%p4403_p13), %s4009_s18, 128, %s4013_s4, %s709_s26  }
 0x231   : > { %s755_s15 = sshll.u32 %s748_s29, 4  ;;  %s756_s15 = int_to_ptr.vmem [resolvable:$true] %s755_s15 }
 0x234   : > { %s4043_s3 = scalar_lea.hbm %s4404_s17, %s2271_s9  ;;  %s3270_s4 = scalar_lea.hbm %s4404_s17, 32 }
 0x235   : > { %s3265_s8 = scalar_lea.hbm %s4043_s3, 16  ;;  %p3271_p2 = scmp.lt.u32.totalorder %s4043_s3, %s4404_s17 }
 0x236   : > { %p3266_p5 = scmp.ne.s32.totalorder %s4043_s3, %s3265_s8  ;;  %p3272_p7 = scmp.lt.u32.totalorder %s3270_s4, %s3265_s8 }
 0x237   : > { %p3274_p3 = scmp.lt.u32.totalorder %s3265_s8, %s4043_s3 }
 0x238   : > { %p3268_p4 = pnand %p3266_p5, %p4402_p6  ;;  %p3273_p9 = por %p3272_p7, %p3271_p2 }
 0x23a   : > { %p3269_p10 = pneg %p3268_p4  ;;  %p3275_p11 = por %p3274_p3, %p3273_p9 }
 0x23c   : > { %p3276_p12 = pnand %p3275_p11, %p3269_p10 }
 0x23e   : > { %3279 = shalt.err (!%p3276_p12)
}
 0x23f   : > { %s3280_s21 = scalar_lea.vmem %s756_s15, 16  ;;  %s3435_s9 = smov [#allocation9]  }
 0x240   : > { %p3281_p8 = scmp.ne.s32.totalorder %s756_s15, %s3280_s21  ;;  %s3285_s28 = sshll.u32 %s3435_s9, 4  ;;  %s3286_s28 = int_to_ptr.vmem [resolvable:$false] %s3285_s28 }
 0x241   : > { %s3287_s6 = scalar_lea.vmem %s3286_s28, 32  ;;  %p3288_p5 = scmp.lt.s32.totalorder %s756_s15, %s3286_s28 }
 0x242   : > { %p3283_p1 = pnand %p3281_p8, %p4402_p6  ;;  %p3289_p4 = scmp.lt.s32.totalorder %s3287_s6, %s3280_s21 }
 0x244   : > { %p3284_p0 = pneg %p3283_p1  ;;  %p3290_p13 = por %p3289_p4, %p3288_p5 }
 0x246   : > { %p3291_p2 = pnand %p3290_p13, %p3284_p0 }
 0x248   : > { %3294 = shalt.err (!%p3291_p2)
}
 0x249   : > { %p4405_p7 = scmp.ne.s32.totalorder %s4386_s23, 0  ;;  %s4406_s29 = sld [smem:[#allocation47_spill]] }
 0x24b   : > { %2602 = dma.hbm_to_vmem [thread:$0]  (!%p4405_p7), %s4043_s3, 16, %s756_s15, %s3830_s19  }
 0x24f   : > { %p4407_p10 = scmp.ne.s32.totalorder %s4406_s29, 0 }
 0x250   : > { %s4067_s13 = sand.u32 (!%p4407_p10), 1, %s3397_s30   ;;  %p4408_p6 = scmp.ne.s32.totalorder (!%p4407_p10), %s4383_s12, 0 }
 0x251   : > { %764 = sbr.rel (%p4407_p10) target bundleno = 3214 (0xc8e), region = 96  ;;  %s4070_s8 = sshll.u32 (!%p4407_p10), %s4067_s13, 3 }
 0x252   : > { %s767_s27 = scalar_lea.sflag (!%p4407_p10), [#allocation5], %s4067_s13  ;;  %s770_s18 = scalar_lea.vmem (!%p4407_p10), [#allocation4], %s4070_s8 }
 0x258   : > { %3348 = dma.done.wait (%p4408_p6), %s767_s27, 128  }
 0x259   : > { %3350 = vsyncadd (%p4408_p6), %s767_s27, 4294967168  ;;  %s775_s23 = sand.u32 1, %s3576_s2   ;;  %s779_s3 = scalar_lea.vmem [#allocation7], %s4070_s8 }
 0x25a   : > { %s776_s19 = scalar_lea.sflag [#allocation8], %s775_s23 }
 0x25b   : > { %3352 = dma.done.wait (%p4408_p6), %s776_s19, 144  }
 0x25c   : > { %3354 = vsyncadd (%p4408_p6), %s776_s19, 4294967152  ;;  %s787_s15 = scalar_lea.vmem [#allocation9], %s4067_s13  ;;  %p4409_p13 = scmp.eq.s32.totalorder %s3576_s2, 0 }
 0x25e   : > { %3356 = dma.done.wait (%p4409_p13), [#allocation11], 32   ;;  %p4410_p9 = pmov %p4409_p13 }
 0x260   : > { %3358 = vsyncadd (%p4410_p9), [#allocation11], 4294967264  ;;  %p4411_p3 = pmov %p4410_p9 }
 0x262   : > { %3360 = dma.done.wait (%p4411_p3), [#allocation14], 272   ;;  %p4412_p11 = pmov %p4411_p3 }
 0x263   : > { %p4413_p12 = pmov %p4411_p3 }
 0x264   : > { %3362 = vsyncadd (%p4412_p11), [#allocation14], 4294967024 }
 0x265   : > { %3364 = dma.done.wait (%p4413_p12), [#allocation17], 272   ;;  %p4414_p8 = pmov %p4411_p3 }
 0x266   : > { %p4415_p1 = pmov %p4411_p3 }
 0x267   : > { %3366 = vsyncadd (%p4414_p8), [#allocation17], 4294967024 }
 0x268   : > { %3368 = dma.done.wait (%p4415_p1), [#allocation20], 272   ;;  %p4416_p0 = pmov %p4415_p1 }
 0x26a   : > { %3370 = vsyncadd (%p4416_p0), [#allocation20], 4294967024  ;;  %p4417_p5 = pmov %p4416_p0 }
 0x26b   : > { %p4418_p4 = pmov %p4416_p0 }
 0x26c   : > { %3372 = dma.done.wait (%p4417_p5), [#allocation23], 272  }
 0x26d   : > { %3374 = vsyncadd (%p4418_p4), [#allocation23], 4294967024  ;;  %p4419_p2 = pmov %p4416_p0 }
 0x26e   : > { %p4420_p7 = pmov %p4416_p0 }
 0x26f   : > { %3376 = dma.done.wait (%p4419_p2), [#allocation26], 32  }
 0x270   : > { %3378 = vsyncadd (%p4420_p7), [#allocation26], 4294967264  ;;  %p4421_p10 = pmov %p4416_p0 }
 0x271   : > { %p4422_p6 = pmov %p4416_p0 }
 0x272   : > { %3380 = dma.done.wait (%p4421_p10), [#allocation29], 272  }
 0x273   : > { %3382 = vsyncadd (%p4422_p6), [#allocation29], 4294967024  ;;  %p4423_p13 = pmov %p4416_p0 }
 0x274   : > { %p4424_p9 = pmov %p4416_p0 }
 0x275   : > { %3384 = dma.done.wait (%p4423_p13), [#allocation32], 528  }
 0x276   : > { %3386 = vsyncadd (%p4424_p9), [#allocation32], 4294966768  ;;  %vm923_vm0 = vcmask 261120   ;;  %v920_v0 = vld [vmem:[%s770_s18] sm:$0xff]  ;;  %v4117_v1 = vld [vmem:[%s779_s3] sm:$0xff]  ;;  %v3436_v16 = vmov 0.0  }
 0x277   : > { %v924_v2 = vsel %vm923_vm0, %v920_v0, 0.0  ;;  %v1131_v3 = vsel %vm923_vm0, %v4117_v1, 0.0  ;;  %v2715_v14 = vld [vmem:[#allocation16] sm:$0xff]   ;;  %v2716_v15 = vld [vmem:[#allocation19] sm:$0xff]   ;;  %2372 = vmatprep.subr.bf16.mxu0 %v3436_v16  ;;  %2380 = vmatprep.subr.bf16.mxu1 %v3436_v16  ;;  %v2717_v17 = vld [vmem:[#allocation16 + $0x8] sm:$0xff]   ;;  %vm3437_vm1 = vmmov 0  }
 0x278   : > { %925 = vadd.xlane.f32.xlu0 %v924_v2  ;;  %2373 = vmatpush3.bf16.msra.mxu0 %v2715_v14  ;;  %v2718_v18 = vld [vmem:[#allocation19 + $0x8] sm:$0xff]   ;;  %v2292_v35 = vld [vmem:[#allocation10] ss:$0 sm:$0xff]  ;;  %v2293_v38 = vld [vmem:[#allocation12] ss:$0 sm:$0xff]  ;;  %vm1104_vm6 = vcmask 60416  }
 0x279   : > { %2381 = vmatpush3.bf16.msra.mxu1 %v2716_v15  ;;  %2374 = vmatprep.subr.bf16.mxu0 %v3436_v16  ;;  %v2719_v43 = vld [vmem:[#allocation13] sm:$0xff]   ;;  %v2720_v46 = vld [vmem:[#allocation13 + $0x8] sm:$0xff]   ;;  %v2298_v50 = vld [vmem:[#allocation21] ss:$0 sm:$0xff]  ;;  %s3438_s2 = smov 120   ;;  %s3439_s12 = smov 112  }
 0x27a   : > { %2382 = vmatprep.subr.bf16.mxu1 %v3436_v16  ;;  %2376 = vmatprep.mubr.msk.bf16.mxu0 %vm3437_vm1, %v3436_v16  ;;  %v2294_v49 = vld [vmem:[#allocation18] ss:$0 sm:$0xff]  ;;  %v2304_v63 = vld [vmem:[#allocation15] ss:$0 sm:$0xff]  ;;  %s3440_s4 = smov 104   ;;  %vm1262_vm7 = vcmask 64512  }
 0x27b   : > { %2384 = vmatprep.mubr.msk.bf16.mxu1 %vm3437_vm1, %v3436_v16  ;;  %vm1502_vm8 = vcmask 1043456   ;;  %s3441_s26 = smov 16   ;;  %s3442_s10 = smov 8   ;;  %vm1697_vm10 = vcmask 130048   ;;  %vm1699_vm11 = vcmask 195584   ;;  %vm1914_vm14 = vcmask 523264  }
 0x27c   : > { %1132 = vadd.xlane.f32.xlu0 %v1131_v3  ;;  %2375 = vmatpush3.bf16.msra.mxu0 %v2717_v17  ;;  %s3443_s21 = smov 24   ;;  %s4425_s9 = sld [smem:[#allocation46_spill]] }
 0x27d   : > { %2383 = vmatpush3.bf16.msra.mxu1 %v2718_v18  ;;  %2388 = vmatprep.subr.bf16.mxu0 %v3436_v16  ;;  %s914_s6 = scalar_lea.vmem [#allocation34], %s4070_s8  ;;  %s4426_s23 = sld [smem:[#allocation68_spill]] }
 0x27e   : > { %2396 = vmatprep.subr.bf16.mxu1 %v3436_v16  ;;  %s1975_s29 = sshll.u32 %s914_s6, 4  ;;  %s1961_s8 = scalar_lea.sflag [#allocation6], %s4067_s13  ;;  %s4247_s29 = int_to_ptr.vmem [resolvable:$true] %s1975_s29 }
 0x27f   : > { %s3295_s3 = scalar_lea.vmem %s4247_s29, 128  ;;  %p4427_p11 = scmp.ne.s32.totalorder %s4384_s24, 0 }
 0x280   : > { %p3296_p3 = scmp.ne.s32.totalorder %s4247_s29, %s3295_s3 }
 0x282   : > { %s2333_s28 = sshll.u32 %s4425_s9, 7  ;;  %p3297_p12 = pnand %p3296_p3, %p4427_p11 }
 0x283   : > { %s4245_s19 = scalar_lea.hbm %s4426_s23, %s2333_s28 }
 0x284   : > { %p3298_p8 = pneg %p3297_p12 }
 0x305   : > { %v926_v4 = vpop.xlane.xlu0 %925 }
 0x306   : > { %v928_v5 = vmul.f32 0.03125, %v926_v4 }
 0x308   : > { %v929_v6 = vsub.f32 %v920_v0, %v928_v5 }
 0x309   : > { %v1133_v7 = vpop.xlane.xlu0 %1132 }
 0x30a   : > { %v1135_v8 = vmul.f32 0.03125, %v1133_v7  ;;  %v930_v9 = vmul.f32 %v929_v6, %v929_v6  ;;  %v951_v36 = vmul.f32 %v2292_v35, %v929_v6 }
 0x30c   : > { %v1136_v10 = vsub.f32 %v4117_v1, %v1135_v8  ;;  %v931_v11 = vsel %vm923_vm0, %v930_v9, 0.0 }
 0x30d   : > { %932 = vadd.xlane.f32.xlu1 %v931_v11 }
 0x30e   : > { %v1137_v12 = vmul.f32 %v1136_v10, %v1136_v10  ;;  %v1158_v40 = vmul.f32 %v2292_v35, %v1136_v10 }
 0x310   : > { %v1138_v13 = vsel %vm923_vm0, %v1137_v12, 0.0 }
 0x311   : > { %1139 = vadd.xlane.f32.xlu1 %v1138_v13 }
 0x39a   : > { %v933_v19 = vpop.xlane.xlu1 %932 }
 0x39b   : > { %v934_v20 = vmul.f32 0.032258064, %v933_v19 }
 0x39d   : > { %2729 = vrsqrt.f32 %v934_v20  ;;  %vm937_vm2 = vcmp.eq.f32.partialorder %v934_v20, inf  ;;  %v940_v25 = vand.u32 2147483648, %v934_v20  ;;  %vm939_vm3 = vcmp.eq.f32.partialorder %v934_v20, 0.0 }
 0x39e   : > { %v1140_v21 = vpop.xlane.xlu1 %1139 }
 0x39f   : > { %v1141_v22 = vmul.f32 0.032258064, %v1140_v21 }
 0x3a1   : > { %2731 = vrsqrt.f32 %v1141_v22  ;;  %vm1144_vm4 = vcmp.eq.f32.partialorder %v1141_v22, inf  ;;  %v1147_v31 = vand.u32 2147483648, %v1141_v22  ;;  %vm1146_vm5 = vcmp.eq.f32.partialorder %v1141_v22, 0.0 }
 0x3a7   : > { %v2730_v23 = vpop.eup %2729 }
 0x3a8   : > { %v936_v24 = vmul.f32 %v2730_v23, %v934_v20 }
 0x3aa   : > { %v938_v26 = vsel %vm937_vm2, %v934_v20, %v936_v24 }
 0x3ab   : > { %v2732_v27 = vpop.eup %2731  ;;  %v941_v28 = vsel %vm939_vm3, %v940_v25, %v938_v26 }
 0x3ac   : > { %v942_v29 = vadd.f32 1e-06, %v941_v28  ;;  %v1143_v30 = vmul.f32 %v2732_v27, %v1141_v22 }
 0x3ae   : > { %v1145_v32 = vsel %vm1144_vm4, %v1141_v22, %v1143_v30  ;;  %2733 = vrcp.f32 %v942_v29 }
 0x3af   : > { %v1148_v33 = vsel %vm1146_vm5, %v1147_v31, %v1145_v32  ;;  %v1257_v31 = vlaneseq  ;;  %v1249_v32 = vld [vmem:[%s787_s15] sm:$0x1]  ;;  %s3444_s15 = smov [#allocation34]  }
 0x3b0   : > { %v1149_v34 = vadd.f32 1e-06, %v1148_v33  ;;  %vm1250_vm9 = vcmp.eq.f32.partialorder %v1249_v32, 0.0 }
 0x3b1   : > { %v1258_v33 = vshrl.u32 %v1257_v31, 7  ;;  %v1251_v35 = vsel %vm1250_vm9, -1e+09, %v3436_v16 }
 0x3b2   : > { %2735 = vrcp.f32 %v1149_v34 }
 0x3b3   : > { %v1259_v34 = vsub.s32 0, %v1258_v33 }
 0x3b8   : > { %v2734_v37 = vpop.eup %2733 }
 0x3b9   : > { %v952_v39 = vmul.f32 %v2734_v37, %v951_v36  ;;  %v1260_v36 = vrot.slane %v1251_v35, %v1259_v34 }
 0x3bb   : > { %v959_v41 = vadd.f32 %v2293_v38, %v952_v39 }
 0x3bc   : > { %v2736_v42 = vpop.eup %2735 }
 0x3bd   : > { %v960_v44 = vpack.c.bf16 %v959_v41, %v959_v41  ;;  %v1159_v45 = vmul.f32 %v2736_v42, %v1158_v40 }
 0x3bf   : > { %2377 = vmatmul.mubr.msk.bf16.vlgmr.msra.gmra.mrb[0].mxu0 %vm923_vm0, %v960_v44  ;;  %2385 = vmatmul.mubr.msk.bf16.vlgmr.msra.gmra.mrb[0].mxu1 %vm923_vm0, %v960_v44  ;;  %v1166_v47 = vadd.f32 %v2293_v38, %v1159_v45 }
 0x3c0   : > { %2389 = vmatpush3.bf16.msra.mxu0 %v2719_v43  ;;  %2392 = vmatprep.mubr.msk.bf16.mxu0 %vm3437_vm1, %v3436_v16 }
 0x3c1   : > { %2390 = vmatprep.subr.bf16.mxu0 %v3436_v16  ;;  %2398 = vmatprep.mubr.msk.bf16.mxu1 %vm3437_vm1, %v3436_v16  ;;  %v1167_v48 = vpack.c.bf16 %v1166_v47, %v1166_v47 }
 0x3c4   : > { %2391 = vmatpush3.bf16.msra.mxu0 %v2720_v46 }
 0x3c5   : > { %2402 = vmatprep.subr.bf16.mxu0 %v3436_v16 }
 0x3c7   : > { %2393 = vmatmul.mubr.msk.bf16.vlgmr.msra.gmra.mrb[4].mxu0 %vm923_vm0, %v1167_v48 }
 0x3c8   : > { %2404 = vmatprep.mubr.msk.bf16.mxu0 %vm3437_vm1, %v3436_v16 }
 0x492   : > { %v1021_v51 = vpop.f32.mrb[0].mxu0  ;;  %v1084_v52 = vpop.f32.mrb[0].mxu1 }
 0x493   : > { %v1022_v53 = vadd.f32 %v2294_v49, %v1021_v51  ;;  %v4146_v54 = vadd.f32 %v2298_v50, %v1084_v52  ;;  %v2378_v55 = vpop.f32.mrb[1].mxu0  ;;  %v2386_v56 = vpop.f32.mrb[1].mxu1 }
 0x494   : > { %v1024_v57 = vpop.f32.mrb[2].mxu0  ;;  %v1087_v58 = vpop.f32.mrb[2].mxu1 }
 0x495   : > { %v1100_v59 = vpack.c.bf16 %v1022_v53, %v1022_v53  ;;  %v1119_v60 = vpack.c.bf16 %v4146_v54, %v4146_v54  ;;  %v2387_v61 = vpop.f32.mrb[3].mxu1  ;;  %1091 = vrot.lane.b32.xlu0 %v1022_v53, %s3438_s2  ;;  %v2379_v62 = vpop.f32.mrb[3].mxu0  ;;  %1094 = vrot.lane.b32.xlu1 %v1022_v53, %s3439_s12 }
 0x497   : > { %1105 = vst.msk [vmem:[#allocation2] sm:$0xf] %vm1104_vm6, %v1100_v59  ;;  %1123 = vst.msk [vmem:[#allocation3] sm:$0xf] %vm1104_vm6, %v1119_v60 }
 0x499   : > { %1097 = vrot.lane.b32.xlu1 %v1022_v53, %s3440_s4 }
 0x49a   : > { %v1228_v0 = vpop.f32.mrb[4].mxu0 }
 0x49b   : > { %v1229_v2 = vadd.f32 %v2304_v63, %v1228_v0  ;;  %v2394_v3 = vpop.f32.mrb[5].mxu0 }
 0x49c   : > { %v1231_v4 = vpop.f32.mrb[6].mxu0 }
 0x49d   : > { %v1234_v5 = vmul.f32 0.35355338, %v1229_v2  ;;  %v2395_v6 = vpop.f32.mrb[7].mxu0 }
 0x49e   : > { %v1252_v7 = vld [vmem:[#allocation2] sm:$0xf]  ;;  %v1495_v24 = vld [vmem:[#allocation3] sm:$0xf] }
 0x49f   : > { %1239 = vrot.lane.b32.xlu0 %v1234_v5, %s3439_s12  ;;  %1236 = vrot.lane.b32.xlu1 %v1234_v5, %s3438_s2  ;;  %v1267_v8 = vsel %vm1262_vm7, %v1252_v7, 0  ;;  %v1245_v9 = vpack.c.bf16 %v1234_v5, %v1234_v5  ;;  %v1504_v28 = vsel %vm1502_vm8, %v1495_v24, 0 }
 0x4a0   : > { %2397 = vmatpush3.bf16.xpose.msra.mxu1 %v1267_v8 }
 0x4a1   : > { %2408 = vmatprep.subr.bf16.mxu1 %v3436_v16 }
 0x4a3   : > { %1242 = vrot.lane.b32.xlu1 %v1234_v5, %s3440_s4 }
 0x4a7   : > { %2399 = vmatmul.mubr.msk.bf16.vlgmr.msra.gmra.mrb[4].mxu1 %vm1262_vm7, %v1245_v9 }
 0x4a8   : > { %2410 = vmatprep.mubr.msk.bf16.mxu1 %vm3437_vm1, %v3436_v16 }
 0x507   : > { %v1095_v10 = vpop.permute.xlu1 %1094  ;;  %v1092_v11 = vpop.permute.xlu0 %1091 }
 0x508   : > { %v1102_v12 = vpack.c.bf16 %v1095_v10, %v1095_v10  ;;  %v1101_v13 = vpack.c.bf16 %v1092_v11, %v1092_v11 }
 0x50a   : > { %1107 = vst.msk [vmem:[#allocation2 + $0x8] sm:$0xf] %vm1104_vm6, %v1102_v12  ;;  %1106 = vst.msk [vmem:[#allocation2 + $0x4] sm:$0xf] %vm1104_vm6, %v1101_v13 }
 0x50b   : > { %v1098_v14 = vpop.permute.xlu1 %1097 }
 0x50c   : > { %v1103_v15 = vpack.c.bf16 %v1098_v14, %v1098_v14 }
 0x50e   : > { %1108 = vst.msk [vmem:[#allocation2 + $0xc] sm:$0xf] %vm1104_vm6, %v1103_v15 }
 0x511   : > { %v1253_v17 = vld [vmem:[#allocation2 + $0x4] sm:$0xf]  ;;  %v1254_v18 = vld [vmem:[#allocation2 + $0x8] sm:$0xf]  ;;  %v1237_v21 = vpop.permute.xlu1 %1236  ;;  %v1240_v22 = vpop.permute.xlu0 %1239 }
 0x512   : > { %v1313_v19 = vsel %vm1262_vm7, %v1253_v17, 0  ;;  %v1359_v20 = vsel %vm1262_vm7, %v1254_v18, 0  ;;  %v1246_v25 = vpack.c.bf16 %v1237_v21, %v1237_v21  ;;  %v1247_v26 = vpack.c.bf16 %v1240_v22, %v1240_v22 }
 0x513   : > { %2403 = vmatpush3.bf16.xpose.msra.mxu0 %v1313_v19  ;;  %2409 = vmatpush3.bf16.xpose.msra.mxu1 %v1359_v20 }
 0x514   : > { %2414 = vmatprep.subr.bf16.mxu0 %v3436_v16  ;;  %2420 = vmatprep.subr.bf16.mxu1 %v3436_v16 }
 0x515   : > { %v1255_v23 = vld [vmem:[#allocation2 + $0xc] sm:$0xf]  ;;  %v1243_v29 = vpop.permute.xlu1 %1242 }
 0x516   : > { %v1405_v27 = vsel %vm1262_vm7, %v1255_v23, 0  ;;  %v1248_v30 = vpack.c.bf16 %v1243_v29, %v1243_v29 }
 0x51a   : > { %2405 = vmatmul.mubr.msk.bf16.vlgmr.msra.gmra.mrb[8].mxu0 %vm1262_vm7, %v1246_v25  ;;  %2411 = vmatmul.mubr.msk.bf16.vlgmr.msra.gmra.mrb[8].mxu1 %vm1262_vm7, %v1247_v26 }
 0x51b   : > { %2415 = vmatpush3.bf16.xpose.msra.mxu0 %v1405_v27  ;;  %2421 = vmatpush3.bf16.msra.mxu1 %v1504_v28 }
 0x51c   : > { %2416 = vmatprep.mubr.msk.bf16.mxu0 %vm3437_vm1, %v3436_v16  ;;  %2422 = vmatprep.mubr.msk.bf16.mxu1 %vm3437_vm1, %v3436_v16 }
 0x51d   : > { %2426 = vmatprep.subr.bf16.mxu0 %v3436_v16  ;;  %2432 = vmatprep.subr.bf16.mxu1 %v3436_v16 }
 0x522   : > { %2417 = vmatmul.mubr.msk.bf16.vlgmr.msra.gmra.mrb[12].mxu0 %vm1262_vm7, %v1248_v30 }
 0x523   : > { %2428 = vmatprep.mubr.msk.bf16.mxu0 %vm3437_vm1, %v3436_v16 }
 0x57a   : > { %v1303_v37 = vpop.f32.mrb[4].mxu1 }
 0x57b   : > { %v1304_v38 = vadd.f32 %v1303_v37, %v1260_v36  ;;  %v2400_v39 = vpop.f32.mrb[5].mxu1 }
 0x57c   : > { %v1306_v40 = vpop.f32.mrb[6].mxu1 }
 0x57d   : > { %v2401_v41 = vpop.f32.mrb[7].mxu1  ;;  %v1447_v42 = vsel %vm1262_vm7, %v1304_v38, -inf }
 0x57e   : > { %1448 = vmax.xlane.f32.xlu0 %v1447_v42 }
 0x5ed   : > { %v1349_v43 = vpop.f32.mrb[8].mxu0  ;;  %v1395_v44 = vpop.f32.mrb[8].mxu1 }
 0x5ee   : > { %v1350_v45 = vadd.f32 %v1349_v43, %v1260_v36  ;;  %v1396_v46 = vadd.f32 %v1395_v44, %v1260_v36  ;;  %v2406_v47 = vpop.f32.mrb[9].mxu0  ;;  %v2412_v48 = vpop.f32.mrb[9].mxu1 }
 0x5ef   : > { %v1352_v49 = vpop.f32.mrb[10].mxu0  ;;  %v1398_v50 = vpop.f32.mrb[10].mxu1 }
 0x5f0   : > { %v2407_v51 = vpop.f32.mrb[11].mxu0  ;;  %v2413_v52 = vpop.f32.mrb[11].mxu1  ;;  %v1450_v53 = vsel %vm1262_vm7, %v1350_v45, -inf  ;;  %v1453_v55 = vsel %vm1262_vm7, %v1396_v46, -inf }
 0x5f1   : > { %1451 = vmax.xlane.f32.xlu1 %v1450_v53  ;;  %1454 = vmax.xlane.f32.xlu0 %v1453_v55  ;;  %v2721_v51 = vld [vmem:[#allocation22] sm:$0xff]  }
 0x5f5   : > { %v1441_v56 = vpop.f32.mrb[12].mxu0 }
 0x5f6   : > { %v1442_v57 = vadd.f32 %v1441_v56, %v1260_v36  ;;  %v2418_v58 = vpop.f32.mrb[13].mxu0 }
 0x5f7   : > { %v1444_v59 = vpop.f32.mrb[14].mxu0 }
 0x5f8   : > { %v2419_v60 = vpop.f32.mrb[15].mxu0  ;;  %v1456_v61 = vsel %vm1262_vm7, %v1442_v57, -inf }
 0x5f9   : > { %1457 = vmax.xlane.f32.xlu0 %v1456_v61  ;;  %v2722_v61 = vld [vmem:[#allocation22 + $0x8] sm:$0xff]  }
 0x60b   : > { %v1449_v62 = vpop.xlane.xlu0 %1448 }
 0x60c   : > { %v1459_v63 = vsub.f32 %v1304_v38, %v1449_v62 }
 0x60e   : > { %v1463_v0 = vmul.f32 1.442695, %v1459_v63 }
 0x610   : > { %2737 = vpow2.f32 %v1463_v0 }
 0x61a   : > { %v2738_v2 = vpop.eup %2737 }
 0x61b   : > { %v1471_v3 = vsel %vm1262_vm7, %v2738_v2, 0.0 }
 0x61c   : > { %1472 = vadd.xlane.f32.xlu0 %v1471_v3 }
 0x67e   : > { %v1452_v4 = vpop.xlane.xlu1 %1451  ;;  %v1455_v5 = vpop.xlane.xlu0 %1454 }
 0x67f   : > { %v1460_v6 = vsub.f32 %v1350_v45, %v1452_v4  ;;  %v1461_v7 = vsub.f32 %v1396_v46, %v1455_v5 }
 0x681   : > { %v1465_v8 = vmul.f32 1.442695, %v1460_v6  ;;  %v1467_v9 = vmul.f32 1.442695, %v1461_v7 }
 0x683   : > { %2739 = vpow2.f32 %v1465_v8 }
 0x684   : > { %2741 = vpow2.f32 %v1467_v9 }
 0x686   : > { %v1458_v14 = vpop.xlane.xlu0 %1457 }
 0x687   : > { %v1462_v17 = vsub.f32 %v1442_v57, %v1458_v14 }
 0x689   : > { %v1469_v18 = vmul.f32 1.442695, %v1462_v17 }
 0x68d   : > { %v2740_v10 = vpop.eup %2739 }
 0x68e   : > { %v2742_v11 = vpop.eup %2741  ;;  %v1474_v12 = vsel %vm1262_vm7, %v2740_v10, 0.0 }
 0x68f   : > { %1475 = vadd.xlane.f32.xlu1 %v1474_v12  ;;  %v1477_v13 = vsel %vm1262_vm7, %v2742_v11, 0.0 }
 0x690   : > { %1478 = vadd.xlane.f32.xlu0 %v1477_v13 }
 0x6a0   : > { %1113 = vrot.lane.b32.xlu1 %v4146_v54, %s3439_s12 }
 0x6a6   : > { %1110 = vrot.lane.b32.xlu0 %v4146_v54, %s3438_s2  ;;  %s3299_s2 = sshll.u32 %s3444_s15, 4  ;;  %s3300_s2 = int_to_ptr.vmem [resolvable:$false] %s3299_s2 }
 0x6a7   : > { %s3301_s12 = scalar_lea.vmem %s3300_s2, 256  ;;  %p3302_p1 = scmp.lt.s32.totalorder %s4247_s29, %s3300_s2 }
 0x6a8   : > { %p3303_p0 = scmp.lt.s32.totalorder %s3301_s12, %s3295_s3 }
 0x6a9   : > { %v1473_v15 = vpop.xlane.xlu0 %1472 }
 0x6aa   : > { %2743 = vrcp.f32 %v1473_v15  ;;  %p3304_p5 = por %p3303_p0, %p3302_p1 }
 0x6ab   : > { %2745 = vpow2.f32 %v1469_v18 }
 0x6ac   : > { %p3305_p4 = pnand %p3304_p5, %p3298_p8 }
 0x6b4   : > { %v2744_v19 = vpop.eup %2743 }
 0x6b5   : > { %v1487_v20 = vmul.f32 %v2744_v19, %v2738_v2  ;;  %v2746_v22 = vpop.eup %2745 }
 0x6b6   : > { %v1480_v23 = vsel %vm1262_vm7, %v2746_v22, 0.0 }
 0x6b7   : > { %v1491_v21 = vpack.c.bf16 %v1487_v20, %v1487_v20 }
 0x6b9   : > { %2423 = vmatmul.mubr.msk.bf16.vlgmr.msra.gmra.mrb[12].mxu1 %vm1262_vm7, %v1491_v21 }
 0x6ba   : > { %2434 = vmatprep.mubr.msk.bf16.mxu1 %vm3437_vm1, %v3436_v16 }
 0x6c4   : > { %1481 = vadd.xlane.f32.xlu1 %v1480_v23 }
 0x6d5   : > { %1116 = vrot.lane.b32.xlu1 %v4146_v54, %s3440_s4 }
 0x71c   : > { %v1476_v24 = vpop.xlane.xlu1 %1475 }
 0x71d   : > { %2747 = vrcp.f32 %v1476_v24  ;;  %v1479_v25 = vpop.xlane.xlu0 %1478  ;;  %v2723_v24 = vld [vmem:[#allocation28] sm:$0xff]  }
 0x71e   : > { %2749 = vrcp.f32 %v1479_v25  ;;  %v2724_v25 = vld [vmem:[#allocation28 + $0x8] sm:$0xff]  }
 0x720   : > { %v1114_v26 = vpop.permute.xlu1 %1113 }
 0x721   : > { %v1121_v27 = vpack.c.bf16 %v1114_v26, %v1114_v26  ;;  %v1111_v28 = vpop.permute.xlu0 %1110  ;;  %v2726_v26 = vld [vmem:[#allocation31 + $0x8] sm:$0xff]  }
 0x722   : > { %v1120_v29 = vpack.c.bf16 %v1111_v28, %v1111_v28 }
 0x723   : > { %1125 = vst.msk [vmem:[#allocation3 + $0x8] sm:$0xf] %vm1104_vm6, %v1121_v27 }
 0x724   : > { %1124 = vst.msk [vmem:[#allocation3 + $0x4] sm:$0xf] %vm1104_vm6, %v1120_v29 }
 0x727   : > { %v2748_v30 = vpop.eup %2747 }
 0x728   : > { %v2750_v31 = vpop.eup %2749  ;;  %v1488_v33 = vmul.f32 %v2748_v30, %v2740_v10  ;;  %v2316_v10 = vld [vmem:[#allocation24] ss:$0 sm:$0xff] }
 0x729   : > { %v1489_v32 = vmul.f32 %v2750_v31, %v2742_v11 }
 0x72a   : > { %v1497_v34 = vld [vmem:[#allocation3 + $0x8] sm:$0xf]  ;;  %v1492_v38 = vpack.c.bf16 %v1488_v33, %v1488_v33 }
 0x72b   : > { %v1496_v35 = vld [vmem:[#allocation3 + $0x4] sm:$0xf]  ;;  %v1596_v54 = vsel %vm1502_vm8, %v1497_v34, 0  ;;  %v1493_v37 = vpack.c.bf16 %v1489_v32, %v1489_v32 }
 0x72c   : > { %v1550_v36 = vsel %vm1502_vm8, %v1496_v35, 0  ;;  %2433 = vmatpush3.bf16.msra.mxu1 %v1596_v54  ;;  %v2320_v35 = vld [vmem:[#allocation25] ss:$0 sm:$0xff] }
 0x72d   : > { %2427 = vmatpush3.bf16.msra.mxu0 %v1550_v36  ;;  %2444 = vmatprep.subr.bf16.mxu1 %v3436_v16 }
 0x72e   : > { %2438 = vmatprep.subr.bf16.mxu0 %v3436_v16 }
 0x72f   : > { %2435 = vmatmul.mubr.msk.bf16.vlgmr.msra.gmra.mrb[16].mxu1 %vm1262_vm7, %v1493_v37  ;;  %v2321_v37 = vld [vmem:[#allocation27] ss:$0 sm:$0xff] }
 0x730   : > { %2429 = vmatmul.mubr.msk.bf16.vlgmr.msra.gmra.mrb[16].mxu0 %vm1262_vm7, %v1492_v38  ;;  %2448 = vmatprep.mubr.msk.bf16.mxu1 %vm3437_vm1, %v3436_v16 }
 0x731   : > { %2440 = vmatprep.mubr.msk.bf16.mxu0 %vm3437_vm1, %v3436_v16  ;;  %2445 = vmatpush3.bf16.msra.mxu1 %v2721_v51  ;;  %v2326_v51 = vld [vmem:[#allocation33] ss:$0 sm:$0xff] }
 0x732   : > { %2446 = vmatprep.subr.bf16.mxu1 %v3436_v16 }
 0x735   : > { %2447 = vmatpush3.bf16.msra.mxu1 %v2722_v61 }
 0x736   : > { %2460 = vmatprep.subr.bf16.mxu1 %v3436_v16 }
 0x751   : > { %v1482_v39 = vpop.xlane.xlu1 %1481 }
 0x752   : > { %2751 = vrcp.f32 %v1482_v39 }
 0x755   : > { %v1117_v40 = vpop.permute.xlu1 %1116 }
 0x756   : > { %v1122_v41 = vpack.c.bf16 %v1117_v40, %v1117_v40 }
 0x758   : > { %1126 = vst.msk [vmem:[#allocation3 + $0xc] sm:$0xf] %vm1104_vm6, %v1122_v41  ;;  %v2727_v41 = vld [vmem:[#allocation31 + $0x10] sm:$0xff]  }
 0x75c   : > { %v2752_v42 = vpop.eup %2751 }
 0x75d   : > { %v1490_v43 = vmul.f32 %v2752_v42, %v2746_v22  ;;  %v2728_v42 = vld [vmem:[#allocation31 + $0x18] sm:$0xff]  }
 0x75f   : > { %v1498_v44 = vld [vmem:[#allocation3 + $0xc] sm:$0xf]  ;;  %v1494_v46 = vpack.c.bf16 %v1490_v43, %v1490_v43  ;;  %v2322_v43 = vld [vmem:[#allocation30] ss:$0 sm:$0xff] }
 0x760   : > { %v1642_v45 = vsel %vm1502_vm8, %v1498_v44, 0 }
 0x761   : > { %2439 = vmatpush3.bf16.msra.mxu0 %v1642_v45 }
 0x762   : > { %2452 = vmatprep.subr.bf16.mxu0 %v3436_v16 }
 0x764   : > { %2441 = vmatmul.mubr.msk.bf16.vlgmr.msra.gmra.mrb[20].mxu0 %vm1262_vm7, %v1494_v46 }
 0x765   : > { %2456 = vmatprep.mubr.msk.bf16.mxu0 %vm3437_vm1, %v3436_v16  ;;  %2453 = vmatpush3.bf16.msra.mxu0 %v2723_v24 }
 0x766   : > { %2454 = vmatprep.subr.bf16.mxu0 %v3436_v16 }
 0x769   : > { %2455 = vmatpush3.bf16.msra.mxu0 %v2724_v25 }
 0x78c   : > { %v1540_v47 = vpop.f32.mrb[12].mxu1 }
 0x78d   : > { %v2424_v48 = vpop.f32.mrb[13].mxu1 }
 0x78e   : > { %v1543_v49 = vpop.f32.mrb[14].mxu1 }
 0x78f   : > { %v2425_v50 = vpop.f32.mrb[15].mxu1 }
 0x802   : > { %v1632_v52 = vpop.f32.mrb[16].mxu1 }
 0x803   : > { %v1586_v53 = vpop.f32.mrb[16].mxu0  ;;  %1689 = vrot.lane.b32.xlu0 %v1632_v52, %s3441_s26  ;;  %v2436_v55 = vpop.f32.mrb[17].mxu1 }
 0x804   : > { %1685 = vrot.lane.b32.xlu1 %v1586_v53, %s3442_s10  ;;  %v2430_v56 = vpop.f32.mrb[17].mxu0  ;;  %v1635_v57 = vpop.f32.mrb[18].mxu1 }
 0x805   : > { %v1589_v58 = vpop.f32.mrb[18].mxu0  ;;  %v2437_v59 = vpop.f32.mrb[19].mxu1 }
 0x806   : > { %v2431_v60 = vpop.f32.mrb[19].mxu0 }
 0x837   : > { %v1678_v62 = vpop.f32.mrb[20].mxu0 }
 0x838   : > { %1693 = vrot.lane.b32.xlu1 %v1678_v62, %s3443_s21  ;;  %v2442_v63 = vpop.f32.mrb[21].mxu0 }
 0x839   : > { %v1681_v0 = vpop.f32.mrb[22].mxu0 }
 0x83a   : > { %v2443_v2 = vpop.f32.mrb[23].mxu0 }
 0x875   : > { %v1690_v5 = vpop.permute.xlu0 %1689 }
 0x876   : > { %v1686_v3 = vpop.permute.xlu1 %1685 }
 0x877   : > { %v1696_v4 = vsel %vm1262_vm7, %v1540_v47, %v1686_v3 }
 0x878   : > { %v1698_v6 = vsel %vm1697_vm10, %v1696_v4, %v1690_v5 }
 0x8aa   : > { %v1694_v7 = vpop.permute.xlu1 %1693 }
 0x8ab   : > { %v1700_v8 = vsel %vm1699_vm11, %v1698_v6, %v1694_v7 }
 0x8ac   : > { %v1701_v9 = vpack.c.bf16 %v1700_v8, %v1700_v8 }
 0x8ae   : > { %2449 = vmatmul.mubr.msk.bf16.vlgmr.msra.gmra.mrb[20].mxu1 %vm923_vm0, %v1701_v9 }
 0x8af   : > { %2468 = vmatprep.mubr.msk.bf16.mxu1 %vm3437_vm1, %v3436_v16 }
 0x981   : > { %v1762_v11 = vpop.f32.mrb[20].mxu1 }
 0x982   : > { %v1763_v12 = vadd.f32 %v2316_v10, %v1762_v11  ;;  %v2450_v13 = vpop.f32.mrb[21].mxu1 }
 0x983   : > { %v1765_v14 = vpop.f32.mrb[22].mxu1 }
 0x984   : > { %v4228_v15 = vadd.f32 %v1763_v12, %v4117_v1  ;;  %v2451_v17 = vpop.f32.mrb[23].mxu1  ;;  %v2725_v1 = vld [vmem:[#allocation31] sm:$0xff]  }
 0x985   : > { %2461 = vmatpush3.bf16.msra.mxu1 %v2725_v1 }
 0x986   : > { %v1771_v18 = vsel %vm923_vm0, %v4228_v15, 0.0  ;;  %2462 = vmatprep.subr.bf16.mxu1 %v3436_v16 }
 0x987   : > { %1772 = vadd.xlane.f32.xlu0 %v1771_v18 }
 0x989   : > { %2463 = vmatpush3.bf16.msra.mxu1 %v2726_v26 }
 0x98a   : > { %2464 = vmatprep.subr.bf16.mxu1 %v3436_v16 }
 0x98d   : > { %2465 = vmatpush3.bf16.msra.mxu1 %v2727_v41 }
 0x98e   : > { %2466 = vmatprep.subr.bf16.mxu1 %v3436_v16 }
 0x991   : > { %2467 = vmatpush3.bf16.msra.mxu1 %v2728_v42 }
 0xa14   : > { %v1773_v19 = vpop.xlane.xlu0 %1772 }
 0xa15   : > { %v1774_v20 = vmul.f32 0.03125, %v1773_v19 }
 0xa17   : > { %v1775_v21 = vsub.f32 %v4228_v15, %v1774_v20 }
 0xa19   : > { %v1776_v22 = vmul.f32 %v1775_v21, %v1775_v21  ;;  %v1797_v54 = vmul.f32 %v2320_v35, %v1775_v21 }
 0xa1b   : > { %v1777_v23 = vsel %vm923_vm0, %v1776_v22, 0.0 }
 0xa1c   : > { %1778 = vadd.xlane.f32.xlu1 %v1777_v23 }
 0xaa9   : > { %v1779_v27 = vpop.xlane.xlu1 %1778 }
 0xaaa   : > { %v1780_v28 = vmul.f32 0.032258064, %v1779_v27 }
 0xaac   : > { %2753 = vrsqrt.f32 %v1780_v28  ;;  %vm1783_vm12 = vcmp.eq.f32.partialorder %v1780_v28, inf  ;;  %v1786_v31 = vand.u32 2147483648, %v1780_v28  ;;  %vm1785_vm13 = vcmp.eq.f32.partialorder %v1780_v28, 0.0 }
 0xab6   : > { %v2754_v29 = vpop.eup %2753 }
 0xab7   : > { %v1782_v30 = vmul.f32 %v2754_v29, %v1780_v28 }
 0xab9   : > { %v1784_v32 = vsel %vm1783_vm12, %v1780_v28, %v1782_v30 }
 0xaba   : > { %v1787_v33 = vsel %vm1785_vm13, %v1786_v31, %v1784_v32 }
 0xabb   : > { %v1788_v34 = vadd.f32 1e-06, %v1787_v33 }
 0xabd   : > { %2755 = vrcp.f32 %v1788_v34 }
 0xac7   : > { %v2756_v36 = vpop.eup %2755 }
 0xac8   : > { %v1798_v38 = vmul.f32 %v2756_v36, %v1797_v54 }
 0xaca   : > { %v1805_v39 = vadd.f32 %v2321_v37, %v1798_v38 }
 0xacc   : > { %v1806_v40 = vpack.c.bf16 %v1805_v39, %v1805_v39 }
 0xace   : > { %2457 = vmatmul.mubr.msk.bf16.vlgmr.msra.gmra.mrb[24].mxu0 %vm923_vm0, %v1806_v40 }
 0xba1   : > { %v1867_v44 = vpop.f32.mrb[24].mxu0 }
 0xba2   : > { %v1868_v45 = vadd.f32 %v2322_v43, %v1867_v44  ;;  %v2458_v46 = vpop.f32.mrb[25].mxu0 }
 0xba3   : > { %v1870_v47 = vpop.f32.mrb[26].mxu0 }
 0xba4   : > { %v1873_v48 = vmax.f32 %v1868_v45, 0.0  ;;  %v2459_v49 = vpop.f32.mrb[27].mxu0 }
 0xba6   : > { %v1874_v50 = vpack.c.bf16 %v1873_v48, %v1873_v48 }
 0xba8   : > { %2469 = vmatmul.mubr.msk.bf16.vlgmr.msra.gmra.mrb[24].mxu1 %vm1914_vm14, %v1874_v50 }
 0xc7b   : > { %v1952_v52 = vpop.f32.mrb[24].mxu1 }
 0xc7c   : > { %v1953_v16 = vadd.f32 %v2326_v51, %v1952_v52  ;;  %v2470_v53 = vpop.f32.mrb[25].mxu1 }
 0xc7d   : > { %v1955_v55 = vpop.f32.mrb[26].mxu1 }
 0xc7e   : > { %v1958_v56 = vadd.f32 %v1953_v16, %v4228_v15  ;;  %v2471_v57 = vpop.f32.mrb[27].mxu1 }
 0xc80   : > { %1959 = vst.msk [vmem:[%s914_s6] sm:$0xff] %vm923_vm0, %v1958_v56 }
 0xc81   : > { %3308 = shalt.err (!%p3305_p4)
}
 0xc82   : > { %s3309_s13 = scalar_lea.hbm %s4245_s19, 128  ;;  %s3313_s10 = scalar_lea.hbm %s4426_s23, 256 }
 0xc83   : > { %p3310_p2 = scmp.ne.s32.totalorder %s4245_s19, %s3309_s13  ;;  %p3314_p6 = scmp.lt.u32.totalorder %s4245_s19, %s4426_s23 }
 0xc84   : > { %p3315_p13 = scmp.lt.u32.totalorder %s3313_s10, %s3309_s13  ;;  %p3317_p3 = scmp.lt.u32.totalorder %s3309_s13, %s4245_s19 }
 0xc85   : > { %p3311_p7 = pnand %p3310_p2, %p4427_p11 }
 0xc86   : > { %p3316_p9 = por %p3315_p13, %p3314_p6 }
 0xc87   : > { %p3312_p10 = pneg %p3311_p7 }
 0xc88   : > { %p3318_p12 = por %p3317_p3, %p3316_p9 }
 0xc8a   : > { %p3319_p8 = pnand %p3318_p12, %p3312_p10 }
 0xc8c   : > { %3322 = shalt.err (!%p3319_p8)
}
 0xc8d   : > { %2542 = dma.vmem_to_hbm [thread:$0]  (%p4427_p11), %s4247_s29, 128, %s4245_s19, %s1961_s8  }
 0xc8e PF: > { %s1987_s28 = sand.u32 1, %s3393_s0   ;;  %p4428_p1 = scmp.ne.s32.totalorder %s4385_s25, 0 }
 0xc8f   : > { %p4429_p0 = scmp.ge.s32.totalorder %s3413_s22, 2  ;;  %s1988_s6 = scalar_lea.sflag [#allocation6], %s1987_s28 }
 0xc91   : > { %p2604_p5 = pnand %p4429_p0, %p4428_p1 }
 0xc93   : > { %3388 = dma.done.wait (!%p2604_p5), %s1988_s6, 128  }
 0xc94   : > { %3390 = vsyncadd (!%p2604_p5), %s1988_s6, 4294967168  ;;  %s46_s22 = sadd.s32 1, %s3413_s22   ;;  %s4430_s24 = sld [smem:[#allocation48_spill]] }
 0xc95   : > { %p43_p4 = scmp.ge.s32.totalorder %s46_s22, 4   ;;  %s4431_s0 = smov %s3397_s30 }
 0xc96   : > { %s4432_s30 = smov %s3401_s20  ;;  %s4433_s20 = smov %s3800_s16 }
 0xc97   : > { %s4434_s21 = smov %s3409_s1  ;;  %45 = sbr.rel (!%p43_p4) target bundleno = 37 (0x25), region = 233 }
 0xc9a   : > { %s4435_s1 = smov %s4430_s24 }
 0xc9e   :  { %1993 = vsyncpa [#allocation5], 1 }
 0xc9f   :  { %1995 = vsyncpa [#allocation5 + $0x1], 1 }
 0xca0   :  { %1996 = vsyncpa [#allocation8], 1 }
 0xca1   :  { %1998 = vsyncpa [#allocation8 + $0x1], 1 }
 0xca2   :  { %1999 = vsyncpa [#allocation11], 1 }
 0xca3   :  { %2000 = vsyncpa [#allocation14], 1 }
 0xca4   :  { %2001 = vsyncpa [#allocation17], 1 }
 0xca5   :  { %2002 = vsyncpa [#allocation20], 1 }
 0xca6   :  { %2003 = vsyncpa [#allocation23], 1 }
 0xca7   :  { %2004 = vsyncpa [#allocation26], 1 }
 0xca8   :  { %2005 = vsyncpa [#allocation29], 1 }
 0xca9   :  { %2006 = vsyncpa [#allocation32], 1 }
 0xcaa   :  { %2007 = vsyncpa [#allocation6], 1 }
 0xcab   :  { %2009 = vsyncpa [#allocation6 + $0x1], 1 }

</bundles_post_ra>
